<compile_context>
chip_gen: v6e
topology: v6e:2x2x1
jax: 0.10.0
libtpu: 0.0.40
codegen_flags: <defaults>
</compile_context>

<pallas_src>
import jax
import jax.numpy as jnp
from jax.experimental import pallas as pl
from jax.experimental.pallas import tpu as pltpu


def _round_up(x, m):
    return (x + m - 1) // m * m


def encoder_kernel(x_ref, w1_ref, b1_ref, w2_ref, b2_ref, out_ref):
    # x: (TM, IN_P), w1: (IN_P, 512), b1: (1, 512), w2: (512, OUT_P), b2: (1, OUT_P)
    x = x_ref[...]
    h = jnp.dot(x, w1_ref[...], preferred_element_type=jnp.float32) + b1_ref[...]
    h = jnp.maximum(h, 0.0)                                    # ReLU
    y = jnp.dot(h, w2_ref[...], preferred_element_type=jnp.float32) + b2_ref[...]
    out_ref[...] = y.astype(out_ref.dtype)


def encoder_forward(x_nchw, w1, b1, w2, b2, *, tm=256):
    """x_nchw: (B, C, H, W) float32. w1:(512,784) b1:(512,) w2:(L,512) b2:(L,).
    Returns (B, latent_dims)."""
    B = x_nchw.shape[0]
    in_features = x_nchw.shape[1] * x_nchw.shape[2] * x_nchw.shape[3]
    hidden = w1.shape[0]          # 512
    latent = w2.shape[0]          # latent_dims

    x = x_nchw.reshape(B, in_features)                         # torch.flatten(x, 1)

    # Lane-align: 784 -> 896 features, latent -> >=128 output lanes.
    in_p = _round_up(in_features, 128)
    out_p = _round_up(latent, 128)

    # Batch tile: full MXU height when batch is large enough, else just a legal
    # sublane-aligned tile (avoids huge zero padding at tiny B).
    TM = tm if B >= tm else max(8, _round_up(B, 8))
    Bp = _round_up(B, TM)

    xp = jnp.zeros((Bp, in_p), x.dtype).at[:B, :in_features].set(x)
    w1_t = jnp.zeros((in_p, hidden), w1.dtype).at[:in_features, :].set(w1.T)
    b1_2d = b1.reshape(1, hidden)
    w2_t = jnp.zeros((hidden, out_p), w2.dtype).at[:, :latent].set(w2.T)
    b2_2d = jnp.zeros((1, out_p), b2.dtype).at[:, :latent].set(b2)

    flops = 2 * Bp * (in_p * hidden + hidden * out_p)
    bytes_accessed = 4 * (Bp * in_p + in_p * hidden + hidden
                          + hidden * out_p + out_p + Bp * out_p)

    out = pl.pallas_call(
        encoder_kernel,
        out_shape=jax.ShapeDtypeStruct((Bp, out_p), x.dtype),
        grid=(Bp // TM,),
        in_specs=[
            pl.BlockSpec((TM, in_p), lambda i: (i, 0)),        # x: tiled over batch
            pl.BlockSpec((in_p, hidden), lambda i: (0, 0)),    # W1: resident
            pl.BlockSpec((1, hidden), lambda i: (0, 0)),       # b1: resident
            pl.BlockSpec((hidden, out_p), lambda i: (0, 0)),   # W2: resident
            pl.BlockSpec((1, out_p), lambda i: (0, 0)),        # b2: resident
        ],
        out_specs=pl.BlockSpec((TM, out_p), lambda i: (i, 0)),
        compiler_params=pltpu.CompilerParams(
            dimension_semantics=("parallel",),
        ),
        cost_estimate=pl.CostEstimate(
            flops=flops, transcendentals=0, bytes_accessed=bytes_accessed),
    )(xp, w1_t, b1_2d, w2_t, b2_2d)

    return out[:B, :latent]


def init_params(key, in_features, hidden, latent):
    """Deterministic init mimicking nn.Linear default (uniform +-1/sqrt(fan_in))."""
    k1, k2, k3, k4 = jax.random.split(key, 4)
    bound1 = 1.0 / jnp.sqrt(in_features)
    bound2 = 1.0 / jnp.sqrt(hidden)
    w1 = jax.random.uniform(k1, (hidden, in_features), jnp.float32, -bound1, bound1)
    b1 = jax.random.uniform(k2, (hidden,), jnp.float32, -bound1, bound1)
    w2 = jax.random.uniform(k3, (latent, hidden), jnp.float32, -bound2, bound2)
    b2 = jax.random.uniform(k4, (latent,), jnp.float32, -bound2, bound2)
    return w1, b1, w2, b2


if __name__ == "__main__":
    key = jax.random.PRNGKey(0)
    B, C, H, W = 2, 1, 28, 28       # matches default input_dim=(1, 28, 28)
    latent_dims = 32
    in_features = C * H * W         # 784
    hidden = 512

    kx, kp = jax.random.split(key)
    x = jax.random.normal(kx, (B, C, H, W), jnp.float32)
    w1, b1, w2, b2 = init_params(kp, in_features, hidden, latent_dims)

    out = jax.block_until_ready(encoder_forward(x, w1, b1, w2, b2))

    # pure-JAX reference check
    xf = x.reshape(B, in_features)
    ref = jnp.maximum(xf @ w1.T + b1, 0.0) @ w2.T + b2
    assert out.shape == (B, latent_dims)
    assert jnp.allclose(out, ref, atol=1e-4, rtol=1e-4)

    print("KERNEL_OK")
</pallas_src>

<mosaic_0001>
module attributes {stable_mosaic.version = 11 : i64} {
  func.func @encoder_kernel(%arg0: i32, %arg1: memref<8x896xf32, #tpu.memory_space<vmem>>, %arg2: memref<896x512xf32, #tpu.memory_space<vmem>>, %arg3: memref<1x512xf32, #tpu.memory_space<vmem>>, %arg4: memref<512x128xf32, #tpu.memory_space<vmem>>, %arg5: memref<1x128xf32, #tpu.memory_space<vmem>>, %arg6: memref<8x128xf32, #tpu.memory_space<vmem>>) attributes {dimension_semantics = [#tpu.dimension_semantics<parallel>], iteration_bounds = array<i64: 1>, scalar_prefetch = 0 : i64, scratch_operands = 0 : i64, tpu.core_type = #tpu.core_type<tc>, window_params = [{transform_indices = @transform_0, window_bounds = array<i64: 8, 896>}, {pipeline_mode = #tpu.pipeline_mode<synchronous>, transform_indices = @transform_1, window_bounds = array<i64: 896, 512>}, {pipeline_mode = #tpu.pipeline_mode<synchronous>, transform_indices = @transform_2, window_bounds = array<i64: 1, 512>}, {pipeline_mode = #tpu.pipeline_mode<synchronous>, transform_indices = @transform_3, window_bounds = array<i64: 512, 128>}, {pipeline_mode = #tpu.pipeline_mode<synchronous>, transform_indices = @transform_4, window_bounds = array<i64: 1, 128>}, {transform_indices = @transform_5, window_bounds = array<i64: 8, 128>}]} {
    %c0 = arith.constant 0 : index
    %c0_0 = arith.constant 0 : index
    %0 = vector.load %arg1[%c0, %c0_0] : memref<8x896xf32, #tpu.memory_space<vmem>>, vector<8x896xf32>
    %c0_1 = arith.constant 0 : index
    %c0_2 = arith.constant 0 : index
    %1 = vector.load %arg2[%c0_1, %c0_2] : memref<896x512xf32, #tpu.memory_space<vmem>>, vector<896x512xf32>
    %cst = arith.constant dense<0.000000e+00> : vector<8x512xf32>
    %2 = tpu.matmul %0, %1, %cst {dimension_numbers = #tpu.dot_dimension_numbers<[1], [0], [0], [1], [0, 0, 1, 1], [], []>} : vector<8x896xf32>, vector<896x512xf32>, vector<8x512xf32> -> vector<8x512xf32>
    %c0_3 = arith.constant 0 : index
    %c0_4 = arith.constant 0 : index
    %3 = vector.load %arg3[%c0_3, %c0_4] : memref<1x512xf32, #tpu.memory_space<vmem>>, vector<1x512xf32>
    %4 = vector.broadcast %3 : vector<1x512xf32> to vector<8x512xf32>
    %5 = arith.addf %2, %4 : vector<8x512xf32>
    %cst_5 = arith.constant 0.000000e+00 : f32
    %6 = vector.broadcast %cst_5 : f32 to vector<8x512xf32>
    %7 = arith.maximumf %5, %6 : vector<8x512xf32>
    %c0_6 = arith.constant 0 : index
    %c0_7 = arith.constant 0 : index
    %8 = vector.load %arg4[%c0_6, %c0_7] : memref<512x128xf32, #tpu.memory_space<vmem>>, vector<512x128xf32>
    %cst_8 = arith.constant dense<0.000000e+00> : vector<8x128xf32>
    %9 = tpu.matmul %7, %8, %cst_8 {dimension_numbers = #tpu.dot_dimension_numbers<[1], [0], [0], [1], [0, 0, 1, 1], [], []>} : vector<8x512xf32>, vector<512x128xf32>, vector<8x128xf32> -> vector<8x128xf32>
    %c0_9 = arith.constant 0 : index
    %c0_10 = arith.constant 0 : index
    %10 = vector.load %arg5[%c0_9, %c0_10] : memref<1x128xf32, #tpu.memory_space<vmem>>, vector<1x128xf32>
    %11 = vector.broadcast %10 : vector<1x128xf32> to vector<8x128xf32>
    %12 = arith.addf %9, %11 : vector<8x128xf32>
    %c0_11 = arith.constant 0 : index
    %c0_12 = arith.constant 0 : index
    %13 = vector.load %arg6[%c0_11, %c0_12] : memref<8x128xf32, #tpu.memory_space<vmem>>, vector<8x128xf32>
    tpu.vector_store %arg6[%c0_11, %c0_12], %12 {strides = array<i32>} : memref<8x128xf32, #tpu.memory_space<vmem>>, vector<8x128xf32>,
    return
  }
  func.func @transform_0(%arg0: i32) -> (i32, i32) {
    %c0_i32 = arith.constant 0 : i32
    %c0_i32_0 = arith.constant 0 : i32
    return %arg0, %c0_i32 : i32, i32
  }
  func.func @transform_1(%arg0: i32) -> (i32, i32) {
    %c0_i32 = arith.constant 0 : i32
    %c0_i32_0 = arith.constant 0 : i32
    %c0_i32_1 = arith.constant 0 : i32
    return %c0_i32, %c0_i32_0 : i32, i32
  }
  func.func @transform_2(%arg0: i32) -> (i32, i32) {
    %c0_i32 = arith.constant 0 : i32
    %c0_i32_0 = arith.constant 0 : i32
    %c0_i32_1 = arith.constant 0 : i32
    return %c0_i32, %c0_i32_0 : i32, i32
  }
  func.func @transform_3(%arg0: i32) -> (i32, i32) {
    %c0_i32 = arith.constant 0 : i32
    %c0_i32_0 = arith.constant 0 : i32
    %c0_i32_1 = arith.constant 0 : i32
    return %c0_i32, %c0_i32_0 : i32, i32
  }
  func.func @transform_4(%arg0: i32) -> (i32, i32) {
    %c0_i32 = arith.constant 0 : i32
    %c0_i32_0 = arith.constant 0 : i32
    %c0_i32_1 = arith.constant 0 : i32
    return %c0_i32, %c0_i32_0 : i32, i32
  }
  func.func @transform_5(%arg0: i32) -> (i32, i32) {
    %c0_i32 = arith.constant 0 : i32
    %c0_i32_0 = arith.constant 0 : i32
    return %arg0, %c0_i32 : i32, i32
  }
}

</mosaic_0001>

<bundles_post_ra>
// kernel: tpu_custom_call.1
= control target key start
LH: loop header
LB: loop body
LE: loop exit
PB: predicated region body
PF: predicated region fallthrough
CT: control target
= control target key end

     0   :  { %10 = vsyncpa [#allocation3], 0  ;;  %s1651_s0 = inlined_call_operand.hbm [shape: f32[8,896], index: 0, kind: input, shape index: {}]   ;;  %s1652_s1 = inlined_call_operand.hbm [shape: f32[896,512], index: 1, kind: input, shape index: {}]   ;;  %s1653_s2 = inlined_call_operand.hbm [shape: f32[1,512], index: 2, kind: input, shape index: {}]   ;;  %s1654_s3 = inlined_call_operand.hbm [shape: f32[512,128], index: 3, kind: input, shape index: {}]   ;;  %s1655_s4 = inlined_call_operand.hbm [shape: f32[1,128], index: 4, kind: input, shape index: {}]   ;;  %s1656_s5 = inlined_call_operand.hbm [shape: f32[8,128], index: 5, kind: output, shape index: {}]  }
   0x1   :  { %11 = vsyncpa [#allocation6], 0 }
   0x2   :  { %12 = vsyncpa [#allocation9], 0 }
   0x3   :  { %13 = vsyncpa [#allocation4], 0  ;;  %s1574_s18 = smov [#allocation5]  }
   0x4   :  { %s29_s19 = sshll.u32 %s1574_s18, 4  ;;  %s30_s19 = int_to_ptr.vmem [resolvable:$true] %s29_s19 }
   0x5   :  { %s1454_s20 = scalar_lea.vmem %s30_s19, 57344  ;;  %p1459_p1 = scmp.lt.s32.totalorder %s30_s19, %s30_s19 }
   0x6   :  { %p1455_p0 = scmp.ne.s32.totalorder %s30_s19, %s1454_s20  ;;  %p1460_p2 = scmp.lt.s32.totalorder %s1454_s20, %s1454_s20 }
   0x8   :  { %p1461_p3 = por %p1460_p2, %p1459_p1 }
   0xa   :  { %p1462_p4 = pnand %p1461_p3, %p1455_p0 }
   0xc   :  { %1465 = shalt.err (!%p1462_p4)
}
   0xd   :  { %s1575_s21 = smov 512   ;;  %s1576_s22 = smov 32  }
   0xe   :  { %35 = dma.hbm_to_vmem [thread:$0]  %s1652_s1, 57344, %s30_s19, [#allocation6], %s1575_s21, %s1575_s21, %s1576_s22  }
   0xf   :  { %s1577_s25 = smov [#allocation8]  }
  0x10   :  { %s51_s26 = sshll.u32 %s1577_s25, 4  ;;  %s52_s26 = int_to_ptr.vmem [resolvable:$true] %s51_s26 }
  0x11   :  { %s1474_s27 = scalar_lea.vmem %s52_s26, 8192  ;;  %p1479_p6 = scmp.lt.s32.totalorder %s52_s26, %s52_s26 }
  0x12   :  { %p1475_p5 = scmp.ne.s32.totalorder %s52_s26, %s1474_s27  ;;  %p1480_p7 = scmp.lt.s32.totalorder %s1474_s27, %s1474_s27 }
  0x14   :  { %p1481_p8 = por %p1480_p7, %p1479_p6 }
  0x16   :  { %p1482_p9 = pnand %p1481_p8, %p1475_p5 }
  0x18   :  { %1485 = shalt.err (!%p1482_p9)
}
  0x19   :  { %s1578_s28 = smov 128   ;;  %s1579_s29 = smov 8  }
  0x1a   :  { %57 = dma.hbm_to_vmem [thread:$0]  %s1654_s3, 8192, %s52_s26, [#allocation9], %s1578_s28, %s1578_s28, %s1579_s29  }
  0x1b   :  { %s1580_s7 = smov [#allocation2]   ;;  %s1581_s9 = smov [#allocation7]  }
  0x1c   :  { %s20_s8 = sshll.u32 %s1580_s7, 4  ;;  %s42_s1 = sshll.u32 %s1581_s9, 4  ;;  %s21_s8 = int_to_ptr.vmem [resolvable:$true] %s20_s8  ;;  %s43_s1 = int_to_ptr.vmem [resolvable:$true] %s42_s1 }
  0x1d   :  { %s1494_s10 = scalar_lea.vmem %s21_s8, 896  ;;  %p1499_p11 = scmp.lt.s32.totalorder %s21_s8, %s21_s8 }
  0x1e   :  { %p1495_p10 = scmp.ne.s32.totalorder %s21_s8, %s1494_s10  ;;  %p1500_p12 = scmp.lt.s32.totalorder %s1494_s10, %s1494_s10 }
  0x20   :  { %p1501_p13 = por %p1500_p12, %p1499_p11 }
  0x22   :  { %p1502_p0 = pnand %p1501_p13, %p1495_p10 }
  0x24   :  { %1505 = shalt.err (!%p1502_p0)
}
  0x25   :  { %23 = dma.hbm_to_vmem [thread:$0]  %s1651_s0, 896, %s21_s8, [#allocation3]  }
  0x26   :  { %s1514_s13 = scalar_lea.vmem %s43_s1, 64  ;;  %p1519_p2 = scmp.lt.s32.totalorder %s43_s1, %s43_s1 }
  0x27   :  { %p1515_p1 = scmp.ne.s32.totalorder %s43_s1, %s1514_s13  ;;  %p1520_p3 = scmp.lt.s32.totalorder %s1514_s13, %s1514_s13 }
  0x29   :  { %p1521_p4 = por %p1520_p3, %p1519_p2 }
  0x2b   :  { %p1522_p5 = pnand %p1521_p4, %p1515_p1 }
  0x2d   :  { %1525 = shalt.err (!%p1522_p5)
}
  0x2e   :  { %45 = dma.hbm_to_vmem [thread:$0]  %s1653_s2, 64, %s43_s1, [#allocation6]  }
  0x2f   :  { %s1582_s15 = smov [#allocation10]  }
  0x30   :  { %s64_s16 = sshll.u32 %s1582_s15, 4  ;;  %s65_s16 = int_to_ptr.vmem [resolvable:$true] %s64_s16 }
  0x31   :  { %s1534_s17 = scalar_lea.vmem %s65_s16, 16  ;;  %s1538_s18 = scalar_lea.vmem %s65_s16, 32 }
  0x32   :  { %p1535_p6 = scmp.ne.s32.totalorder %s65_s16, %s1534_s17  ;;  %p1539_p7 = scmp.lt.s32.totalorder %s65_s16, %s65_s16 }
  0x33   :  { %p1540_p8 = scmp.lt.s32.totalorder %s1538_s18, %s1534_s17 }
  0x35   :  { %p1541_p9 = por %p1540_p8, %p1539_p7 }
  0x37   :  { %p1542_p10 = pnand %p1541_p9, %p1535_p6 }
  0x39   :  { %1545 = shalt.err (!%p1542_p10)
}
  0x3a   :  { %67 = dma.hbm_to_vmem [thread:$0]  %s1655_s4, 16, %s65_s16, [#allocation9]  }
  0x3b   :  { %1566 = dma.done.wait [#allocation3], 896  }
  0x3c   :  { %1567 = vsyncadd [#allocation3], 4294966400 }
  0x3d   :  { %1568 = dma.done.wait [#allocation6], 57408  }
  0x3e   :  { %1569 = vsyncadd [#allocation6], 4294909888 }
  0x3f   :  { %1570 = dma.done.wait [#allocation9], 8208  }
  0x40   :  { %1571 = vsyncadd [#allocation9], 4294959088  ;;  %v151_v0 = vld [vmem:[#allocation5 + $0x1e8] sm:$0xff]  ;;  %v150_v2 = vld [vmem:[#allocation5 + $0x1e0] sm:$0xff]  ;;  %s1584_s2 = smov [#allocation11]  }
  0x41   :  { %v279_v1 = vld [vmem:[#allocation5 + $0x5e8] sm:$0xff]  ;;  %560 = vmatprep.subr.mxu0 %v151_v0  ;;  %v278_v3 = vld [vmem:[#allocation5 + $0x5e0] sm:$0xff]  ;;  %s1350_s4 = sshll.u32 %s1584_s2, 4  ;;  %s1351_s4 = int_to_ptr.vmem [resolvable:$true] %s1350_s4 }
  0x42   :  { %631 = vmatprep.subr.mxu1 %v279_v1  ;;  %v147_v4 = vld [vmem:[#allocation5 + $0x1c8] sm:$0xff]  ;;  %561 = vmatpush1.msra.mxu0 %v150_v2  ;;  %v146_v6 = vld [vmem:[#allocation5 + $0x1c0] sm:$0xff]  ;;  %s1546_s20 = scalar_lea.vmem %s1351_s4, 128  ;;  %p1551_p12 = scmp.lt.s32.totalorder %s1351_s4, %s1351_s4 }
  0x43   :  { %v275_v5 = vld [vmem:[#allocation5 + $0x5c8] sm:$0xff]  ;;  %632 = vmatpush1.msra.mxu1 %v278_v3  ;;  %v274_v7 = vld [vmem:[#allocation5 + $0x5c0] sm:$0xff]  ;;  %562 = vmatprep.subr.mxu0 %v147_v4  ;;  %p1547_p11 = scmp.ne.s32.totalorder %s1351_s4, %s1546_s20  ;;  %p1552_p13 = scmp.lt.s32.totalorder %s1546_s20, %s1546_s20 }
  0x44   :  { %v143_v8 = vld [vmem:[#allocation5 + $0x1a8] sm:$0xff]  ;;  %633 = vmatprep.subr.mxu1 %v275_v5  ;;  %v142_v10 = vld [vmem:[#allocation5 + $0x1a0] sm:$0xff]  ;;  %563 = vmatpush1.msra.mxu0 %v146_v6 }
  0x45   :  { %v271_v9 = vld [vmem:[#allocation5 + $0x5a8] sm:$0xff]  ;;  %v270_v11 = vld [vmem:[#allocation5 + $0x5a0] sm:$0xff]  ;;  %634 = vmatpush1.msra.mxu1 %v274_v7  ;;  %564 = vmatprep.subr.mxu0 %v143_v8  ;;  %p1553_p0 = por %p1552_p13, %p1551_p12 }
  0x46   :  { %v139_v12 = vld [vmem:[#allocation5 + $0x188] sm:$0xff]  ;;  %635 = vmatprep.subr.mxu1 %v271_v9  ;;  %v138_v14 = vld [vmem:[#allocation5 + $0x180] sm:$0xff]  ;;  %565 = vmatpush1.msra.mxu0 %v142_v10 }
  0x47   :  { %v267_v13 = vld [vmem:[#allocation5 + $0x588] sm:$0xff]  ;;  %v266_v15 = vld [vmem:[#allocation5 + $0x580] sm:$0xff]  ;;  %636 = vmatpush1.msra.mxu1 %v270_v11  ;;  %566 = vmatprep.subr.mxu0 %v139_v12  ;;  %p1554_p1 = pnand %p1553_p0, %p1547_p11 }
  0x48   :  { %v135_v16 = vld [vmem:[#allocation5 + $0x168] sm:$0xff]  ;;  %637 = vmatprep.subr.mxu1 %v267_v13  ;;  %v134_v18 = vld [vmem:[#allocation5 + $0x160] sm:$0xff]  ;;  %567 = vmatpush1.msra.mxu0 %v138_v14 }
  0x49   :  { %v263_v17 = vld [vmem:[#allocation5 + $0x568] sm:$0xff]  ;;  %v262_v19 = vld [vmem:[#allocation5 + $0x560] sm:$0xff]  ;;  %638 = vmatpush1.msra.mxu1 %v266_v15  ;;  %568 = vmatprep.subr.mxu0 %v135_v16 }
  0x4a   :  { %v131_v20 = vld [vmem:[#allocation5 + $0x148] sm:$0xff]  ;;  %639 = vmatprep.subr.mxu1 %v263_v17  ;;  %v130_v22 = vld [vmem:[#allocation5 + $0x140] sm:$0xff]  ;;  %569 = vmatpush1.msra.mxu0 %v134_v18 }
  0x4b   :  { %v259_v21 = vld [vmem:[#allocation5 + $0x548] sm:$0xff]  ;;  %v258_v23 = vld [vmem:[#allocation5 + $0x540] sm:$0xff]  ;;  %640 = vmatpush1.msra.mxu1 %v262_v19  ;;  %570 = vmatprep.subr.mxu0 %v131_v20 }
  0x4c   :  { %v127_v24 = vld [vmem:[#allocation5 + $0x128] sm:$0xff]  ;;  %641 = vmatprep.subr.mxu1 %v259_v21  ;;  %v126_v26 = vld [vmem:[#allocation5 + $0x120] sm:$0xff]  ;;  %571 = vmatpush1.msra.mxu0 %v130_v22 }
  0x4d   :  { %v255_v25 = vld [vmem:[#allocation5 + $0x528] sm:$0xff]  ;;  %v254_v27 = vld [vmem:[#allocation5 + $0x520] sm:$0xff]  ;;  %642 = vmatpush1.msra.mxu1 %v258_v23  ;;  %572 = vmatprep.subr.mxu0 %v127_v24 }
  0x4e   :  { %v123_v28 = vld [vmem:[#allocation5 + $0x108] sm:$0xff]  ;;  %643 = vmatprep.subr.mxu1 %v255_v25  ;;  %v122_v30 = vld [vmem:[#allocation5 + $0x100] sm:$0xff]  ;;  %573 = vmatpush1.msra.mxu0 %v126_v26 }
  0x4f   :  { %v251_v29 = vld [vmem:[#allocation5 + $0x508] sm:$0xff]  ;;  %v250_v31 = vld [vmem:[#allocation5 + $0x500] sm:$0xff]  ;;  %644 = vmatpush1.msra.mxu1 %v254_v27  ;;  %574 = vmatprep.subr.mxu0 %v123_v28 }
  0x50   :  { %v119_v32 = vld [vmem:[#allocation5 + $0xe8] sm:$0xff]  ;;  %645 = vmatprep.subr.mxu1 %v251_v29  ;;  %v118_v34 = vld [vmem:[#allocation5 + $0xe0] sm:$0xff]  ;;  %575 = vmatpush1.msra.mxu0 %v122_v30 }
  0x51   :  { %v247_v33 = vld [vmem:[#allocation5 + $0x4e8] sm:$0xff]  ;;  %v246_v35 = vld [vmem:[#allocation5 + $0x4e0] sm:$0xff]  ;;  %646 = vmatpush1.msra.mxu1 %v250_v31  ;;  %576 = vmatprep.subr.mxu0 %v119_v32 }
  0x52   :  { %v115_v36 = vld [vmem:[#allocation5 + $0xc8] sm:$0xff]  ;;  %647 = vmatprep.subr.mxu1 %v247_v33  ;;  %v114_v38 = vld [vmem:[#allocation5 + $0xc0] sm:$0xff]  ;;  %577 = vmatpush1.msra.mxu0 %v118_v34 }
  0x53   :  { %v243_v37 = vld [vmem:[#allocation5 + $0x4c8] sm:$0xff]  ;;  %v242_v39 = vld [vmem:[#allocation5 + $0x4c0] sm:$0xff]  ;;  %648 = vmatpush1.msra.mxu1 %v246_v35  ;;  %578 = vmatprep.subr.mxu0 %v115_v36 }
  0x54   :  { %v111_v40 = vld [vmem:[#allocation5 + $0xa8] sm:$0xff]  ;;  %649 = vmatprep.subr.mxu1 %v243_v37  ;;  %v110_v42 = vld [vmem:[#allocation5 + $0xa0] sm:$0xff]  ;;  %579 = vmatpush1.msra.mxu0 %v114_v38 }
  0x55   :  { %v239_v41 = vld [vmem:[#allocation5 + $0x4a8] sm:$0xff]  ;;  %v238_v43 = vld [vmem:[#allocation5 + $0x4a0] sm:$0xff]  ;;  %650 = vmatpush1.msra.mxu1 %v242_v39  ;;  %580 = vmatprep.subr.mxu0 %v111_v40 }
  0x56   :  { %v107_v44 = vld [vmem:[#allocation5 + $0x88] sm:$0xff]  ;;  %651 = vmatprep.subr.mxu1 %v239_v41  ;;  %v106_v46 = vld [vmem:[#allocation5 + $0x80] sm:$0xff]  ;;  %581 = vmatpush1.msra.mxu0 %v110_v42 }
  0x57   :  { %v235_v45 = vld [vmem:[#allocation5 + $0x488] sm:$0xff]  ;;  %v234_v47 = vld [vmem:[#allocation5 + $0x480] sm:$0xff]  ;;  %652 = vmatpush1.msra.mxu1 %v238_v43  ;;  %582 = vmatprep.subr.mxu0 %v107_v44 }
  0x58   :  { %v103_v48 = vld [vmem:[#allocation5 + $0x68] sm:$0xff]  ;;  %653 = vmatprep.subr.mxu1 %v235_v45  ;;  %v102_v50 = vld [vmem:[#allocation5 + $0x60] sm:$0xff]  ;;  %583 = vmatpush1.msra.mxu0 %v106_v46 }
  0x59   :  { %v231_v49 = vld [vmem:[#allocation5 + $0x468] sm:$0xff]  ;;  %v230_v51 = vld [vmem:[#allocation5 + $0x460] sm:$0xff]  ;;  %654 = vmatpush1.msra.mxu1 %v234_v47  ;;  %584 = vmatprep.subr.mxu0 %v103_v48 }
  0x5a   :  { %v99_v52 = vld [vmem:[#allocation5 + $0x48] sm:$0xff]  ;;  %655 = vmatprep.subr.mxu1 %v231_v49  ;;  %v98_v54 = vld [vmem:[#allocation5 + $0x40] sm:$0xff]  ;;  %585 = vmatpush1.msra.mxu0 %v102_v50 }
  0x5b   :  { %v227_v53 = vld [vmem:[#allocation5 + $0x448] sm:$0xff]  ;;  %v226_v55 = vld [vmem:[#allocation5 + $0x440] sm:$0xff]  ;;  %656 = vmatpush1.msra.mxu1 %v230_v51  ;;  %586 = vmatprep.subr.mxu0 %v99_v52 }
  0x5c   :  { %v95_v56 = vld [vmem:[#allocation5 + $0x28] sm:$0xff]  ;;  %657 = vmatprep.subr.mxu1 %v227_v53  ;;  %v94_v58 = vld [vmem:[#allocation5 + $0x20] sm:$0xff]  ;;  %587 = vmatpush1.msra.mxu0 %v98_v54 }
  0x5d   :  { %v223_v57 = vld [vmem:[#allocation5 + $0x428] sm:$0xff]  ;;  %v222_v59 = vld [vmem:[#allocation5 + $0x420] sm:$0xff]  ;;  %658 = vmatpush1.msra.mxu1 %v226_v55  ;;  %588 = vmatprep.subr.mxu0 %v95_v56 }
  0x5e   :  { %v91_v60 = vld [vmem:[#allocation5 + $0x8] sm:$0xff]  ;;  %659 = vmatprep.subr.mxu1 %v223_v57  ;;  %v90_v62 = vld [vmem:[#allocation5] sm:$0xff]  ;;  %589 = vmatpush1.msra.mxu0 %v94_v58 }
  0x5f   :  { %v219_v61 = vld [vmem:[#allocation5 + $0x408] sm:$0xff]  ;;  %v218_v63 = vld [vmem:[#allocation5 + $0x400] sm:$0xff]  ;;  %660 = vmatpush1.msra.mxu1 %v222_v59  ;;  %590 = vmatprep.subr.mxu0 %v91_v60 }
  0x60   :  { %v215_v0 = vld [vmem:[#allocation5 + $0x3e8] sm:$0xff]  ;;  %661 = vmatprep.subr.mxu1 %v219_v61  ;;  %v214_v2 = vld [vmem:[#allocation5 + $0x3e0] sm:$0xff]  ;;  %591 = vmatpush1.msra.mxu0 %v90_v62 }
  0x61   :  { %v343_v1 = vld [vmem:[#allocation5 + $0x7e8] sm:$0xff]  ;;  %v342_v3 = vld [vmem:[#allocation5 + $0x7e0] sm:$0xff]  ;;  %662 = vmatpush1.msra.mxu1 %v218_v63  ;;  %592 = vmatprep.subr.mxu0 %v215_v0  ;;  %v1630_v63 = vld [vmem:[#allocation2 + $0x8] sm:$0xff] }
  0x62   :  { %v211_v4 = vld [vmem:[#allocation5 + $0x3c8] sm:$0xff]  ;;  %663 = vmatprep.subr.mxu1 %v343_v1  ;;  %v210_v6 = vld [vmem:[#allocation5 + $0x3c0] sm:$0xff]  ;;  %593 = vmatpush2.msra.mxu0 %v214_v2 }
  0x63   :  { %v339_v5 = vld [vmem:[#allocation5 + $0x7c8] sm:$0xff]  ;;  %v338_v7 = vld [vmem:[#allocation5 + $0x7c0] sm:$0xff]  ;;  %664 = vmatpush2.msra.mxu1 %v342_v3  ;;  %594 = vmatprep.subr.mxu0 %v211_v4  ;;  %v85_v3 = vld [vmem:[#allocation2 + $0x10] sm:$0xff] }
  0x64   :  { %v207_v8 = vld [vmem:[#allocation5 + $0x3a8] sm:$0xff]  ;;  %665 = vmatprep.subr.mxu1 %v339_v5  ;;  %v206_v10 = vld [vmem:[#allocation5 + $0x3a0] sm:$0xff]  ;;  %595 = vmatpush2.msra.mxu0 %v210_v6 }
  0x65   :  { %v335_v9 = vld [vmem:[#allocation5 + $0x7a8] sm:$0xff]  ;;  %v334_v11 = vld [vmem:[#allocation5 + $0x7a0] sm:$0xff]  ;;  %666 = vmatpush2.msra.mxu1 %v338_v7  ;;  %596 = vmatprep.subr.mxu0 %v207_v8 }
  0x66   :  { %v203_v12 = vld [vmem:[#allocation5 + $0x388] sm:$0xff]  ;;  %667 = vmatprep.subr.mxu1 %v335_v9  ;;  %v202_v14 = vld [vmem:[#allocation5 + $0x380] sm:$0xff]  ;;  %597 = vmatpush2.msra.mxu0 %v206_v10 }
  0x67   :  { %v331_v13 = vld [vmem:[#allocation5 + $0x788] sm:$0xff]  ;;  %v330_v15 = vld [vmem:[#allocation5 + $0x780] sm:$0xff]  ;;  %668 = vmatpush2.msra.mxu1 %v334_v11  ;;  %598 = vmatprep.subr.mxu0 %v203_v12 }
  0x68   :  { %v199_v16 = vld [vmem:[#allocation5 + $0x368] sm:$0xff]  ;;  %669 = vmatprep.subr.mxu1 %v331_v13  ;;  %v198_v18 = vld [vmem:[#allocation5 + $0x360] sm:$0xff]  ;;  %599 = vmatpush2.msra.mxu0 %v202_v14 }
  0x69   :  { %v327_v17 = vld [vmem:[#allocation5 + $0x768] sm:$0xff]  ;;  %v326_v19 = vld [vmem:[#allocation5 + $0x760] sm:$0xff]  ;;  %670 = vmatpush2.msra.mxu1 %v330_v15  ;;  %600 = vmatprep.subr.mxu0 %v199_v16 }
  0x6a   :  { %v195_v20 = vld [vmem:[#allocation5 + $0x348] sm:$0xff]  ;;  %671 = vmatprep.subr.mxu1 %v327_v17  ;;  %v194_v22 = vld [vmem:[#allocation5 + $0x340] sm:$0xff]  ;;  %601 = vmatpush2.msra.mxu0 %v198_v18 }
  0x6b   :  { %v323_v21 = vld [vmem:[#allocation5 + $0x748] sm:$0xff]  ;;  %v322_v23 = vld [vmem:[#allocation5 + $0x740] sm:$0xff]  ;;  %672 = vmatpush2.msra.mxu1 %v326_v19  ;;  %602 = vmatprep.subr.mxu0 %v195_v20 }
  0x6c   :  { %v191_v24 = vld [vmem:[#allocation5 + $0x328] sm:$0xff]  ;;  %673 = vmatprep.subr.mxu1 %v323_v21  ;;  %v190_v26 = vld [vmem:[#allocation5 + $0x320] sm:$0xff]  ;;  %603 = vmatpush2.msra.mxu0 %v194_v22 }
  0x6d   :  { %v319_v25 = vld [vmem:[#allocation5 + $0x728] sm:$0xff]  ;;  %v318_v27 = vld [vmem:[#allocation5 + $0x720] sm:$0xff]  ;;  %674 = vmatpush2.msra.mxu1 %v322_v23  ;;  %604 = vmatprep.subr.mxu0 %v191_v24 }
  0x6e   :  { %v187_v28 = vld [vmem:[#allocation5 + $0x308] sm:$0xff]  ;;  %675 = vmatprep.subr.mxu1 %v319_v25  ;;  %v186_v30 = vld [vmem:[#allocation5 + $0x300] sm:$0xff]  ;;  %605 = vmatpush2.msra.mxu0 %v190_v26 }
  0x6f   :  { %v315_v29 = vld [vmem:[#allocation5 + $0x708] sm:$0xff]  ;;  %v314_v31 = vld [vmem:[#allocation5 + $0x700] sm:$0xff]  ;;  %676 = vmatpush2.msra.mxu1 %v318_v27  ;;  %606 = vmatprep.subr.mxu0 %v187_v28 }
  0x70   :  { %v183_v32 = vld [vmem:[#allocation5 + $0x2e8] sm:$0xff]  ;;  %677 = vmatprep.subr.mxu1 %v315_v29  ;;  %v182_v34 = vld [vmem:[#allocation5 + $0x2e0] sm:$0xff]  ;;  %607 = vmatpush2.msra.mxu0 %v186_v30 }
  0x71   :  { %v311_v33 = vld [vmem:[#allocation5 + $0x6e8] sm:$0xff]  ;;  %v310_v35 = vld [vmem:[#allocation5 + $0x6e0] sm:$0xff]  ;;  %678 = vmatpush2.msra.mxu1 %v314_v31  ;;  %608 = vmatprep.subr.mxu0 %v183_v32 }
  0x72   :  { %v179_v36 = vld [vmem:[#allocation5 + $0x2c8] sm:$0xff]  ;;  %679 = vmatprep.subr.mxu1 %v311_v33  ;;  %v178_v38 = vld [vmem:[#allocation5 + $0x2c0] sm:$0xff]  ;;  %609 = vmatpush2.msra.mxu0 %v182_v34 }
  0x73   :  { %v307_v37 = vld [vmem:[#allocation5 + $0x6c8] sm:$0xff]  ;;  %v306_v39 = vld [vmem:[#allocation5 + $0x6c0] sm:$0xff]  ;;  %680 = vmatpush2.msra.mxu1 %v310_v35  ;;  %610 = vmatprep.subr.mxu0 %v179_v36 }
  0x74   :  { %v175_v40 = vld [vmem:[#allocation5 + $0x2a8] sm:$0xff]  ;;  %681 = vmatprep.subr.mxu1 %v307_v37  ;;  %v174_v42 = vld [vmem:[#allocation5 + $0x2a0] sm:$0xff]  ;;  %611 = vmatpush2.msra.mxu0 %v178_v38 }
  0x75   :  { %v303_v41 = vld [vmem:[#allocation5 + $0x6a8] sm:$0xff]  ;;  %v302_v43 = vld [vmem:[#allocation5 + $0x6a0] sm:$0xff]  ;;  %682 = vmatpush2.msra.mxu1 %v306_v39  ;;  %612 = vmatprep.subr.mxu0 %v175_v40 }
  0x76   :  { %v171_v44 = vld [vmem:[#allocation5 + $0x288] sm:$0xff]  ;;  %683 = vmatprep.subr.mxu1 %v303_v41  ;;  %v170_v46 = vld [vmem:[#allocation5 + $0x280] sm:$0xff]  ;;  %613 = vmatpush2.msra.mxu0 %v174_v42 }
  0x77   :  { %v299_v45 = vld [vmem:[#allocation5 + $0x688] sm:$0xff]  ;;  %v298_v47 = vld [vmem:[#allocation5 + $0x680] sm:$0xff]  ;;  %684 = vmatpush2.msra.mxu1 %v302_v43  ;;  %614 = vmatprep.subr.mxu0 %v171_v44 }
  0x78   :  { %v167_v48 = vld [vmem:[#allocation5 + $0x268] sm:$0xff]  ;;  %685 = vmatprep.subr.mxu1 %v299_v45  ;;  %v166_v50 = vld [vmem:[#allocation5 + $0x260] sm:$0xff]  ;;  %615 = vmatpush2.msra.mxu0 %v170_v46 }
  0x79   :  { %v295_v49 = vld [vmem:[#allocation5 + $0x668] sm:$0xff]  ;;  %v294_v51 = vld [vmem:[#allocation5 + $0x660] sm:$0xff]  ;;  %686 = vmatpush2.msra.mxu1 %v298_v47  ;;  %616 = vmatprep.subr.mxu0 %v167_v48 }
  0x7a   :  { %v163_v52 = vld [vmem:[#allocation5 + $0x248] sm:$0xff]  ;;  %687 = vmatprep.subr.mxu1 %v295_v49  ;;  %v162_v54 = vld [vmem:[#allocation5 + $0x240] sm:$0xff]  ;;  %617 = vmatpush2.msra.mxu0 %v166_v50 }
  0x7b   :  { %v291_v53 = vld [vmem:[#allocation5 + $0x648] sm:$0xff]  ;;  %v290_v55 = vld [vmem:[#allocation5 + $0x640] sm:$0xff]  ;;  %688 = vmatpush2.msra.mxu1 %v294_v51  ;;  %618 = vmatprep.subr.mxu0 %v163_v52 }
  0x7c   :  { %v159_v56 = vld [vmem:[#allocation5 + $0x228] sm:$0xff]  ;;  %689 = vmatprep.subr.mxu1 %v291_v53  ;;  %v158_v58 = vld [vmem:[#allocation5 + $0x220] sm:$0xff]  ;;  %619 = vmatpush2.msra.mxu0 %v162_v54 }
  0x7d   :  { %v287_v57 = vld [vmem:[#allocation5 + $0x628] sm:$0xff]  ;;  %v286_v59 = vld [vmem:[#allocation5 + $0x620] sm:$0xff]  ;;  %690 = vmatpush2.msra.mxu1 %v290_v55  ;;  %620 = vmatprep.subr.mxu0 %v159_v56 }
  0x7e   :  { %v155_v60 = vld [vmem:[#allocation5 + $0x208] sm:$0xff]  ;;  %691 = vmatprep.subr.mxu1 %v287_v57  ;;  %v154_v62 = vld [vmem:[#allocation5 + $0x200] sm:$0xff]  ;;  %621 = vmatpush2.msra.mxu0 %v158_v58 }
  0x7f   :  { %v283_v61 = vld [vmem:[#allocation5 + $0x608] sm:$0xff]  ;;  %692 = vmatpush2.msra.mxu1 %v286_v59  ;;  %v282_v0 = vld [vmem:[#allocation5 + $0x600] sm:$0xff]  ;;  %622 = vmatprep.subr.mxu0 %v155_v60 }
  0x80   :  { %v86_v1 = vld [vmem:[#allocation2 + $0x18] sm:$0xff]  ;;  %693 = vmatprep.subr.mxu1 %v283_v61  ;;  %v1632_v2 = vld [vmem:[#allocation2] sm:$0xff]  ;;  %623 = vmatpush2.msra.mxu0 %v154_v62 }
  0x81   :  { %624 = vmatprep.mubr.f32.mxu0 %v1630_v63  ;;  %v407_v4 = vld [vmem:[#allocation5 + $0x9e8] sm:$0xff]  ;;  %694 = vmatpush2.msra.mxu1 %v282_v0  ;;  %v406_v6 = vld [vmem:[#allocation5 + $0x9e0] sm:$0xff] }
  0x82   :  { %v535_v5 = vld [vmem:[#allocation5 + $0xde8] sm:$0xff]  ;;  %695 = vmatprep.mubr.f32.mxu1 %v86_v1  ;;  %v534_v7 = vld [vmem:[#allocation5 + $0xde0] sm:$0xff]  ;;  %625 = vmatmul.mubr.f32.vlgmr.msra.gmra.mxu0 %v1632_v2 }
  0x83   :  { %696 = vmatmul.mubr.f32.vlgmr.msra.gmra.mxu1 %v85_v3  ;;  %v403_v8 = vld [vmem:[#allocation5 + $0x9c8] sm:$0xff]  ;;  %702 = vmatprep.subr.mxu0 %v407_v4  ;;  %v402_v10 = vld [vmem:[#allocation5 + $0x9c0] sm:$0xff] }
  0x84   :  { %v531_v9 = vld [vmem:[#allocation5 + $0xdc8] sm:$0xff]  ;;  %773 = vmatprep.subr.mxu1 %v535_v5  ;;  %v530_v11 = vld [vmem:[#allocation5 + $0xdc0] sm:$0xff]  ;;  %703 = vmatpush1.msra.mxu0 %v406_v6 }
  0x85   :  { %774 = vmatpush1.msra.mxu1 %v534_v7  ;;  %v399_v12 = vld [vmem:[#allocation5 + $0x9a8] sm:$0xff]  ;;  %704 = vmatprep.subr.mxu0 %v403_v8  ;;  %v398_v14 = vld [vmem:[#allocation5 + $0x9a0] sm:$0xff]  ;;  %v89_v7 = vld [vmem:[#allocation2 + $0x30] sm:$0xff] }
  0x86   :  { %v527_v13 = vld [vmem:[#allocation5 + $0xda8] sm:$0xff]  ;;  %775 = vmatprep.subr.mxu1 %v531_v9  ;;  %v526_v15 = vld [vmem:[#allocation5 + $0xda0] sm:$0xff]  ;;  %705 = vmatpush1.msra.mxu0 %v402_v10  ;;  %v153_v8 = vld [vmem:[#allocation5 + $0x1f8] sm:$0xff] }
  0x87   :  { %776 = vmatpush1.msra.mxu1 %v530_v11  ;;  %v395_v16 = vld [vmem:[#allocation5 + $0x988] sm:$0xff]  ;;  %706 = vmatprep.subr.mxu0 %v399_v12  ;;  %v394_v18 = vld [vmem:[#allocation5 + $0x980] sm:$0xff]  ;;  %v152_v10 = vld [vmem:[#allocation5 + $0x1f0] sm:$0xff]  ;;  %v1583_v11 = vmov 0.0  }
  0x88   :  { %v523_v17 = vld [vmem:[#allocation5 + $0xd88] sm:$0xff]  ;;  %777 = vmatprep.subr.mxu1 %v527_v13  ;;  %v522_v19 = vld [vmem:[#allocation5 + $0xd80] sm:$0xff]  ;;  %707 = vmatpush1.msra.mxu0 %v398_v14  ;;  %v149_v13 = vld [vmem:[#allocation5 + $0x1d8] sm:$0xff] }
  0x89   :  { %778 = vmatpush1.msra.mxu1 %v526_v15  ;;  %v391_v20 = vld [vmem:[#allocation5 + $0x968] sm:$0xff]  ;;  %708 = vmatprep.subr.mxu0 %v395_v16  ;;  %v390_v22 = vld [vmem:[#allocation5 + $0x960] sm:$0xff]  ;;  %v148_v15 = vld [vmem:[#allocation5 + $0x1d0] sm:$0xff] }
  0x8a   :  { %v519_v21 = vld [vmem:[#allocation5 + $0xd68] sm:$0xff]  ;;  %779 = vmatprep.subr.mxu1 %v523_v17  ;;  %v518_v23 = vld [vmem:[#allocation5 + $0xd60] sm:$0xff]  ;;  %709 = vmatpush1.msra.mxu0 %v394_v18  ;;  %v145_v17 = vld [vmem:[#allocation5 + $0x1b8] sm:$0xff] }
  0x8b   :  { %780 = vmatpush1.msra.mxu1 %v522_v19  ;;  %v387_v24 = vld [vmem:[#allocation5 + $0x948] sm:$0xff]  ;;  %710 = vmatprep.subr.mxu0 %v391_v20  ;;  %v386_v26 = vld [vmem:[#allocation5 + $0x940] sm:$0xff]  ;;  %v144_v19 = vld [vmem:[#allocation5 + $0x1b0] sm:$0xff] }
  0x8c   :  { %v515_v25 = vld [vmem:[#allocation5 + $0xd48] sm:$0xff]  ;;  %781 = vmatprep.subr.mxu1 %v519_v21  ;;  %v514_v27 = vld [vmem:[#allocation5 + $0xd40] sm:$0xff]  ;;  %711 = vmatpush1.msra.mxu0 %v390_v22  ;;  %v141_v21 = vld [vmem:[#allocation5 + $0x198] sm:$0xff] }
  0x8d   :  { %782 = vmatpush1.msra.mxu1 %v518_v23  ;;  %v383_v28 = vld [vmem:[#allocation5 + $0x928] sm:$0xff]  ;;  %712 = vmatprep.subr.mxu0 %v387_v24  ;;  %v382_v30 = vld [vmem:[#allocation5 + $0x920] sm:$0xff]  ;;  %v140_v23 = vld [vmem:[#allocation5 + $0x190] sm:$0xff] }
  0x8e   :  { %v511_v29 = vld [vmem:[#allocation5 + $0xd28] sm:$0xff]  ;;  %783 = vmatprep.subr.mxu1 %v515_v25  ;;  %v510_v31 = vld [vmem:[#allocation5 + $0xd20] sm:$0xff]  ;;  %713 = vmatpush1.msra.mxu0 %v386_v26  ;;  %v137_v25 = vld [vmem:[#allocation5 + $0x178] sm:$0xff] }
  0x8f   :  { %784 = vmatpush1.msra.mxu1 %v514_v27  ;;  %v379_v32 = vld [vmem:[#allocation5 + $0x908] sm:$0xff]  ;;  %714 = vmatprep.subr.mxu0 %v383_v28  ;;  %v378_v34 = vld [vmem:[#allocation5 + $0x900] sm:$0xff]  ;;  %v136_v27 = vld [vmem:[#allocation5 + $0x170] sm:$0xff] }
  0x90   :  { %v507_v33 = vld [vmem:[#allocation5 + $0xd08] sm:$0xff]  ;;  %785 = vmatprep.subr.mxu1 %v511_v29  ;;  %v506_v35 = vld [vmem:[#allocation5 + $0xd00] sm:$0xff]  ;;  %715 = vmatpush1.msra.mxu0 %v382_v30  ;;  %v133_v29 = vld [vmem:[#allocation5 + $0x158] sm:$0xff] }
  0x91   :  { %786 = vmatpush1.msra.mxu1 %v510_v31  ;;  %v375_v36 = vld [vmem:[#allocation5 + $0x8e8] sm:$0xff]  ;;  %716 = vmatprep.subr.mxu0 %v379_v32  ;;  %v374_v38 = vld [vmem:[#allocation5 + $0x8e0] sm:$0xff]  ;;  %v132_v31 = vld [vmem:[#allocation5 + $0x150] sm:$0xff] }
  0x92   :  { %v503_v37 = vld [vmem:[#allocation5 + $0xce8] sm:$0xff]  ;;  %787 = vmatprep.subr.mxu1 %v507_v33  ;;  %v502_v39 = vld [vmem:[#allocation5 + $0xce0] sm:$0xff]  ;;  %717 = vmatpush1.msra.mxu0 %v378_v34  ;;  %v129_v33 = vld [vmem:[#allocation5 + $0x138] sm:$0xff] }
  0x93   :  { %788 = vmatpush1.msra.mxu1 %v506_v35  ;;  %v371_v40 = vld [vmem:[#allocation5 + $0x8c8] sm:$0xff]  ;;  %718 = vmatprep.subr.mxu0 %v375_v36  ;;  %v370_v42 = vld [vmem:[#allocation5 + $0x8c0] sm:$0xff]  ;;  %v128_v35 = vld [vmem:[#allocation5 + $0x130] sm:$0xff] }
  0x94   :  { %v499_v41 = vld [vmem:[#allocation5 + $0xcc8] sm:$0xff]  ;;  %789 = vmatprep.subr.mxu1 %v503_v37  ;;  %v498_v43 = vld [vmem:[#allocation5 + $0xcc0] sm:$0xff]  ;;  %719 = vmatpush1.msra.mxu0 %v374_v38  ;;  %v125_v37 = vld [vmem:[#allocation5 + $0x118] sm:$0xff] }
  0x95   :  { %790 = vmatpush1.msra.mxu1 %v502_v39  ;;  %v367_v44 = vld [vmem:[#allocation5 + $0x8a8] sm:$0xff]  ;;  %720 = vmatprep.subr.mxu0 %v371_v40  ;;  %v366_v46 = vld [vmem:[#allocation5 + $0x8a0] sm:$0xff]  ;;  %v124_v39 = vld [vmem:[#allocation5 + $0x110] sm:$0xff] }
  0x96   :  { %v495_v45 = vld [vmem:[#allocation5 + $0xca8] sm:$0xff]  ;;  %791 = vmatprep.subr.mxu1 %v499_v41  ;;  %v494_v47 = vld [vmem:[#allocation5 + $0xca0] sm:$0xff]  ;;  %721 = vmatpush1.msra.mxu0 %v370_v42  ;;  %v121_v41 = vld [vmem:[#allocation5 + $0xf8] sm:$0xff] }
  0x97   :  { %792 = vmatpush1.msra.mxu1 %v498_v43  ;;  %v363_v48 = vld [vmem:[#allocation5 + $0x888] sm:$0xff]  ;;  %722 = vmatprep.subr.mxu0 %v367_v44  ;;  %v362_v50 = vld [vmem:[#allocation5 + $0x880] sm:$0xff]  ;;  %v120_v43 = vld [vmem:[#allocation5 + $0xf0] sm:$0xff] }
  0x98   :  { %v491_v49 = vld [vmem:[#allocation5 + $0xc88] sm:$0xff]  ;;  %793 = vmatprep.subr.mxu1 %v495_v45  ;;  %v490_v51 = vld [vmem:[#allocation5 + $0xc80] sm:$0xff]  ;;  %723 = vmatpush1.msra.mxu0 %v366_v46  ;;  %v117_v45 = vld [vmem:[#allocation5 + $0xd8] sm:$0xff] }
  0x99   :  { %794 = vmatpush1.msra.mxu1 %v494_v47  ;;  %v359_v52 = vld [vmem:[#allocation5 + $0x868] sm:$0xff]  ;;  %724 = vmatprep.subr.mxu0 %v363_v48  ;;  %v358_v54 = vld [vmem:[#allocation5 + $0x860] sm:$0xff]  ;;  %v116_v47 = vld [vmem:[#allocation5 + $0xd0] sm:$0xff] }
  0x9a   :  { %v487_v53 = vld [vmem:[#allocation5 + $0xc68] sm:$0xff]  ;;  %795 = vmatprep.subr.mxu1 %v491_v49  ;;  %v486_v55 = vld [vmem:[#allocation5 + $0xc60] sm:$0xff]  ;;  %725 = vmatpush1.msra.mxu0 %v362_v50  ;;  %v113_v49 = vld [vmem:[#allocation5 + $0xb8] sm:$0xff] }
  0x9b   :  { %796 = vmatpush1.msra.mxu1 %v490_v51  ;;  %v355_v56 = vld [vmem:[#allocation5 + $0x848] sm:$0xff]  ;;  %726 = vmatprep.subr.mxu0 %v359_v52  ;;  %v354_v58 = vld [vmem:[#allocation5 + $0x840] sm:$0xff]  ;;  %v112_v51 = vld [vmem:[#allocation5 + $0xb0] sm:$0xff] }
  0x9c   :  { %v483_v57 = vld [vmem:[#allocation5 + $0xc48] sm:$0xff]  ;;  %797 = vmatprep.subr.mxu1 %v487_v53  ;;  %v482_v59 = vld [vmem:[#allocation5 + $0xc40] sm:$0xff]  ;;  %727 = vmatpush1.msra.mxu0 %v358_v54  ;;  %v109_v53 = vld [vmem:[#allocation5 + $0x98] sm:$0xff] }
  0x9d   :  { %798 = vmatpush1.msra.mxu1 %v486_v55  ;;  %v351_v60 = vld [vmem:[#allocation5 + $0x828] sm:$0xff]  ;;  %728 = vmatprep.subr.mxu0 %v355_v56  ;;  %v350_v62 = vld [vmem:[#allocation5 + $0x820] sm:$0xff]  ;;  %v108_v55 = vld [vmem:[#allocation5 + $0x90] sm:$0xff] }
  0x9e   :  { %v479_v61 = vld [vmem:[#allocation5 + $0xc28] sm:$0xff]  ;;  %799 = vmatprep.subr.mxu1 %v483_v57  ;;  %v478_v0 = vld [vmem:[#allocation5 + $0xc20] sm:$0xff]  ;;  %729 = vmatpush1.msra.mxu0 %v354_v58  ;;  %v105_v57 = vld [vmem:[#allocation5 + $0x78] sm:$0xff] }
  0x9f   :  { %800 = vmatpush1.msra.mxu1 %v482_v59  ;;  %v347_v1 = vld [vmem:[#allocation5 + $0x808] sm:$0xff]  ;;  %730 = vmatprep.subr.mxu0 %v351_v60  ;;  %v346_v4 = vld [vmem:[#allocation5 + $0x800] sm:$0xff]  ;;  %v104_v59 = vld [vmem:[#allocation5 + $0x70] sm:$0xff] }
  0xa0   :  { %v475_v3 = vld [vmem:[#allocation5 + $0xc08] sm:$0xff]  ;;  %801 = vmatprep.subr.mxu1 %v479_v61  ;;  %v474_v5 = vld [vmem:[#allocation5 + $0xc00] sm:$0xff]  ;;  %731 = vmatpush1.msra.mxu0 %v350_v62  ;;  %v101_v61 = vld [vmem:[#allocation5 + $0x58] sm:$0xff] }
  0xa1   :  { %802 = vmatpush1.msra.mxu1 %v478_v0  ;;  %v471_v6 = vld [vmem:[#allocation5 + $0xbe8] sm:$0xff]  ;;  %732 = vmatprep.subr.mxu0 %v347_v1  ;;  %v470_v9 = vld [vmem:[#allocation5 + $0xbe0] sm:$0xff]  ;;  %v100_v0 = vld [vmem:[#allocation5 + $0x50] sm:$0xff] }
  0xa2   :  { %803 = vmatprep.subr.mxu1 %v475_v3  ;;  %733 = vmatpush1.msra.mxu0 %v346_v4  ;;  %v467_v12 = vld [vmem:[#allocation5 + $0xbc8] sm:$0xff]  ;;  %v466_v14 = vld [vmem:[#allocation5 + $0xbc0] sm:$0xff]  ;;  %v97_v3 = vld [vmem:[#allocation5 + $0x38] sm:$0xff] }
  0xa3   :  { %804 = vmatpush1.msra.mxu1 %v474_v5  ;;  %837 = vmatprep.mubr.f32.mxu1 %v1583_v11  ;;  %v463_v16 = vld [vmem:[#allocation5 + $0xba8] sm:$0xff]  ;;  %v462_v18 = vld [vmem:[#allocation5 + $0xba0] sm:$0xff]  ;;  %v96_v5 = vld [vmem:[#allocation5 + $0x30] sm:$0xff] }
  0xa4   :  { %734 = vmatprep.subr.mxu0 %v471_v6  ;;  %838 = vmatmul.mubr.f32.vlgmr.msra.gmra.mxu1 %v89_v7  ;;  %v459_v20 = vld [vmem:[#allocation5 + $0xb88] sm:$0xff]  ;;  %v458_v22 = vld [vmem:[#allocation5 + $0xb80] sm:$0xff]  ;;  %v93_v7 = vld [vmem:[#allocation5 + $0x18] sm:$0xff] }
  0xa5   :  { %844 = vmatprep.subr.mxu1 %v153_v8  ;;  %735 = vmatpush2.msra.mxu0 %v470_v9  ;;  %v455_v24 = vld [vmem:[#allocation5 + $0xb68] sm:$0xff]  ;;  %v454_v26 = vld [vmem:[#allocation5 + $0xb60] sm:$0xff]  ;;  %v1637_v9 = vld [vmem:[#allocation2 + $0x28] sm:$0xff] }
  0xa6   :  { %845 = vmatpush1.msra.mxu1 %v152_v10  ;;  %736 = vmatprep.subr.mxu0 %v467_v12  ;;  %v451_v28 = vld [vmem:[#allocation5 + $0xb48] sm:$0xff]  ;;  %v450_v30 = vld [vmem:[#allocation5 + $0xb40] sm:$0xff]  ;;  %v92_v10 = vld [vmem:[#allocation5 + $0x10] sm:$0xff] }
  0xa7   :  { %846 = vmatprep.subr.mxu1 %v149_v13  ;;  %737 = vmatpush2.msra.mxu0 %v466_v14  ;;  %v447_v32 = vld [vmem:[#allocation5 + $0xb28] sm:$0xff]  ;;  %v446_v34 = vld [vmem:[#allocation5 + $0xb20] sm:$0xff]  ;;  %v217_v13 = vld [vmem:[#allocation5 + $0x3f8] sm:$0xff] }
  0xa8   :  { %847 = vmatpush1.msra.mxu1 %v148_v15  ;;  %738 = vmatprep.subr.mxu0 %v463_v16  ;;  %v443_v36 = vld [vmem:[#allocation5 + $0xb08] sm:$0xff]  ;;  %v442_v38 = vld [vmem:[#allocation5 + $0xb00] sm:$0xff]  ;;  %v281_v14 = vld [vmem:[#allocation5 + $0x5f8] sm:$0xff] }
  0xa9   :  { %848 = vmatprep.subr.mxu1 %v145_v17  ;;  %739 = vmatpush2.msra.mxu0 %v462_v18  ;;  %v439_v40 = vld [vmem:[#allocation5 + $0xae8] sm:$0xff]  ;;  %v438_v42 = vld [vmem:[#allocation5 + $0xae0] sm:$0xff]  ;;  %v216_v15 = vld [vmem:[#allocation5 + $0x3f0] sm:$0xff] }
  0xaa   :  { %849 = vmatpush1.msra.mxu1 %v144_v19  ;;  %740 = vmatprep.subr.mxu0 %v459_v20  ;;  %v435_v44 = vld [vmem:[#allocation5 + $0xac8] sm:$0xff]  ;;  %v434_v46 = vld [vmem:[#allocation5 + $0xac0] sm:$0xff]  ;;  %v280_v16 = vld [vmem:[#allocation5 + $0x5f0] sm:$0xff] }
  0xab   :  { %850 = vmatprep.subr.mxu1 %v141_v21  ;;  %741 = vmatpush2.msra.mxu0 %v458_v22  ;;  %v431_v48 = vld [vmem:[#allocation5 + $0xaa8] sm:$0xff]  ;;  %v430_v50 = vld [vmem:[#allocation5 + $0xaa0] sm:$0xff]  ;;  %v213_v17 = vld [vmem:[#allocation5 + $0x3d8] sm:$0xff] }
  0xac   :  { %851 = vmatpush1.msra.mxu1 %v140_v23  ;;  %742 = vmatprep.subr.mxu0 %v455_v24  ;;  %v427_v52 = vld [vmem:[#allocation5 + $0xa88] sm:$0xff]  ;;  %v426_v54 = vld [vmem:[#allocation5 + $0xa80] sm:$0xff]  ;;  %v277_v18 = vld [vmem:[#allocation5 + $0x5d8] sm:$0xff] }
  0xad   :  { %852 = vmatprep.subr.mxu1 %v137_v25  ;;  %743 = vmatpush2.msra.mxu0 %v454_v26  ;;  %v423_v56 = vld [vmem:[#allocation5 + $0xa68] sm:$0xff]  ;;  %v422_v58 = vld [vmem:[#allocation5 + $0xa60] sm:$0xff]  ;;  %v212_v19 = vld [vmem:[#allocation5 + $0x3d0] sm:$0xff] }
  0xae   :  { %853 = vmatpush1.msra.mxu1 %v136_v27  ;;  %744 = vmatprep.subr.mxu0 %v451_v28  ;;  %v419_v60 = vld [vmem:[#allocation5 + $0xa48] sm:$0xff]  ;;  %v418_v62 = vld [vmem:[#allocation5 + $0xa40] sm:$0xff]  ;;  %v276_v20 = vld [vmem:[#allocation5 + $0x5d0] sm:$0xff] }
  0xaf   :  { %854 = vmatprep.subr.mxu1 %v133_v29  ;;  %745 = vmatpush2.msra.mxu0 %v450_v30  ;;  %v415_v1 = vld [vmem:[#allocation5 + $0xa28] sm:$0xff]  ;;  %v414_v4 = vld [vmem:[#allocation5 + $0xa20] sm:$0xff]  ;;  %v209_v21 = vld [vmem:[#allocation5 + $0x3b8] sm:$0xff] }
  0xb0   :  { %855 = vmatpush1.msra.mxu1 %v132_v31  ;;  %746 = vmatprep.subr.mxu0 %v447_v32  ;;  %v411_v6 = vld [vmem:[#allocation5 + $0xa08] sm:$0xff]  ;;  %v410_v8 = vld [vmem:[#allocation5 + $0xa00] sm:$0xff]  ;;  %v273_v22 = vld [vmem:[#allocation5 + $0x5b8] sm:$0xff] }
  0xb1   :  { %856 = vmatprep.subr.mxu1 %v129_v33  ;;  %747 = vmatpush2.msra.mxu0 %v446_v34  ;;  %v1639_v12 = vld [vmem:[#allocation2 + $0x20] sm:$0xff]  ;;  %v208_v23 = vld [vmem:[#allocation5 + $0x3b0] sm:$0xff]  ;;  %v205_v25 = vld [vmem:[#allocation5 + $0x398] sm:$0xff] }
  0xb2   :  { %857 = vmatpush1.msra.mxu1 %v128_v35  ;;  %748 = vmatprep.subr.mxu0 %v443_v36  ;;  %v272_v24 = vld [vmem:[#allocation5 + $0x5b0] sm:$0xff]  ;;  %v269_v26 = vld [vmem:[#allocation5 + $0x598] sm:$0xff] }
  0xb3   :  { %858 = vmatprep.subr.mxu1 %v125_v37  ;;  %749 = vmatpush2.msra.mxu0 %v442_v38  ;;  %v204_v27 = vld [vmem:[#allocation5 + $0x390] sm:$0xff]  ;;  %v201_v29 = vld [vmem:[#allocation5 + $0x378] sm:$0xff] }
  0xb4   :  { %859 = vmatpush1.msra.mxu1 %v124_v39  ;;  %750 = vmatprep.subr.mxu0 %v439_v40  ;;  %v268_v28 = vld [vmem:[#allocation5 + $0x590] sm:$0xff]  ;;  %v265_v30 = vld [vmem:[#allocation5 + $0x578] sm:$0xff] }
  0xb5   :  { %860 = vmatprep.subr.mxu1 %v121_v41  ;;  %751 = vmatpush2.msra.mxu0 %v438_v42  ;;  %v200_v31 = vld [vmem:[#allocation5 + $0x370] sm:$0xff]  ;;  %v197_v33 = vld [vmem:[#allocation5 + $0x358] sm:$0xff] }
  0xb6   :  { %861 = vmatpush1.msra.mxu1 %v120_v43  ;;  %752 = vmatprep.subr.mxu0 %v435_v44  ;;  %v264_v32 = vld [vmem:[#allocation5 + $0x570] sm:$0xff]  ;;  %v261_v34 = vld [vmem:[#allocation5 + $0x558] sm:$0xff] }
  0xb7   :  { %862 = vmatprep.subr.mxu1 %v117_v45  ;;  %753 = vmatpush2.msra.mxu0 %v434_v46  ;;  %v196_v35 = vld [vmem:[#allocation5 + $0x350] sm:$0xff]  ;;  %v193_v37 = vld [vmem:[#allocation5 + $0x338] sm:$0xff] }
  0xb8   :  { %863 = vmatpush1.msra.mxu1 %v116_v47  ;;  %754 = vmatprep.subr.mxu0 %v431_v48  ;;  %v260_v36 = vld [vmem:[#allocation5 + $0x550] sm:$0xff]  ;;  %v257_v38 = vld [vmem:[#allocation5 + $0x538] sm:$0xff] }
  0xb9   :  { %864 = vmatprep.subr.mxu1 %v113_v49  ;;  %755 = vmatpush2.msra.mxu0 %v430_v50  ;;  %v192_v39 = vld [vmem:[#allocation5 + $0x330] sm:$0xff]  ;;  %v189_v41 = vld [vmem:[#allocation5 + $0x318] sm:$0xff] }
  0xba   :  { %865 = vmatpush1.msra.mxu1 %v112_v51  ;;  %756 = vmatprep.subr.mxu0 %v427_v52  ;;  %v256_v40 = vld [vmem:[#allocation5 + $0x530] sm:$0xff]  ;;  %v253_v42 = vld [vmem:[#allocation5 + $0x518] sm:$0xff] }
  0xbb   :  { %866 = vmatprep.subr.mxu1 %v109_v53  ;;  %757 = vmatpush2.msra.mxu0 %v426_v54  ;;  %v188_v43 = vld [vmem:[#allocation5 + $0x310] sm:$0xff]  ;;  %v185_v45 = vld [vmem:[#allocation5 + $0x2f8] sm:$0xff] }
  0xbc   :  { %867 = vmatpush1.msra.mxu1 %v108_v55  ;;  %758 = vmatprep.subr.mxu0 %v423_v56  ;;  %v252_v44 = vld [vmem:[#allocation5 + $0x510] sm:$0xff]  ;;  %v249_v46 = vld [vmem:[#allocation5 + $0x4f8] sm:$0xff] }
  0xbd   :  { %868 = vmatprep.subr.mxu1 %v105_v57  ;;  %759 = vmatpush2.msra.mxu0 %v422_v58  ;;  %v184_v47 = vld [vmem:[#allocation5 + $0x2f0] sm:$0xff]  ;;  %v181_v49 = vld [vmem:[#allocation5 + $0x2d8] sm:$0xff] }
  0xbe   :  { %869 = vmatpush1.msra.mxu1 %v104_v59  ;;  %760 = vmatprep.subr.mxu0 %v419_v60  ;;  %v248_v48 = vld [vmem:[#allocation5 + $0x4f0] sm:$0xff]  ;;  %v245_v50 = vld [vmem:[#allocation5 + $0x4d8] sm:$0xff] }
  0xbf   :  { %870 = vmatprep.subr.mxu1 %v101_v61  ;;  %761 = vmatpush2.msra.mxu0 %v418_v62  ;;  %v180_v51 = vld [vmem:[#allocation5 + $0x2d0] sm:$0xff]  ;;  %v177_v53 = vld [vmem:[#allocation5 + $0x2b8] sm:$0xff] }
  0xc0   :  { %871 = vmatpush1.msra.mxu1 %v100_v0  ;;  %762 = vmatprep.subr.mxu0 %v415_v1  ;;  %v244_v52 = vld [vmem:[#allocation5 + $0x4d0] sm:$0xff]  ;;  %v241_v54 = vld [vmem:[#allocation5 + $0x4b8] sm:$0xff] }
  0xc1   :  { %872 = vmatprep.subr.mxu1 %v97_v3  ;;  %763 = vmatpush2.msra.mxu0 %v414_v4  ;;  %v176_v55 = vld [vmem:[#allocation5 + $0x2b0] sm:$0xff]  ;;  %v173_v57 = vld [vmem:[#allocation5 + $0x298] sm:$0xff] }
  0xc2   :  { %873 = vmatpush1.msra.mxu1 %v96_v5  ;;  %764 = vmatprep.subr.mxu0 %v411_v6  ;;  %v240_v56 = vld [vmem:[#allocation5 + $0x4b0] sm:$0xff]  ;;  %v237_v58 = vld [vmem:[#allocation5 + $0x498] sm:$0xff] }
  0xc3   :  { %874 = vmatprep.subr.mxu1 %v93_v7  ;;  %765 = vmatpush2.msra.mxu0 %v410_v8  ;;  %v172_v59 = vld [vmem:[#allocation5 + $0x290] sm:$0xff]  ;;  %v169_v61 = vld [vmem:[#allocation5 + $0x278] sm:$0xff] }
  0xc4   :  { %766 = vmatprep.mubr.f32.mxu0 %v1637_v9  ;;  %875 = vmatpush1.msra.mxu1 %v92_v10  ;;  %v236_v60 = vld [vmem:[#allocation5 + $0x490] sm:$0xff]  ;;  %v233_v62 = vld [vmem:[#allocation5 + $0x478] sm:$0xff] }
  0xc5   :  { %767 = vmatmul.mubr.f32.vlgmr.msra.gmra.mxu0 %v1639_v12  ;;  %876 = vmatprep.subr.mxu1 %v217_v13  ;;  %v168_v0 = vld [vmem:[#allocation5 + $0x270] sm:$0xff]  ;;  %v165_v3 = vld [vmem:[#allocation5 + $0x258] sm:$0xff] }
  0xc6   :  { %915 = vmatprep.subr.mxu0 %v281_v14  ;;  %877 = vmatpush2.msra.mxu1 %v216_v15  ;;  %v232_v1 = vld [vmem:[#allocation5 + $0x470] sm:$0xff]  ;;  %v229_v4 = vld [vmem:[#allocation5 + $0x458] sm:$0xff] }
  0xc7   :  { %916 = vmatpush1.msra.mxu0 %v280_v16  ;;  %878 = vmatprep.subr.mxu1 %v213_v17  ;;  %v164_v5 = vld [vmem:[#allocation5 + $0x250] sm:$0xff]  ;;  %v161_v7 = vld [vmem:[#allocation5 + $0x238] sm:$0xff] }
  0xc8   :  { %917 = vmatprep.subr.mxu0 %v277_v18  ;;  %879 = vmatpush2.msra.mxu1 %v212_v19  ;;  %v228_v6 = vld [vmem:[#allocation5 + $0x450] sm:$0xff]  ;;  %v225_v8 = vld [vmem:[#allocation5 + $0x438] sm:$0xff] }
  0xc9   :  { %918 = vmatpush1.msra.mxu0 %v276_v20  ;;  %880 = vmatprep.subr.mxu1 %v209_v21  ;;  %v160_v10 = vld [vmem:[#allocation5 + $0x230] sm:$0xff]  ;;  %v157_v14 = vld [vmem:[#allocation5 + $0x218] sm:$0xff] }
  0xca   :  { %919 = vmatprep.subr.mxu0 %v273_v22  ;;  %881 = vmatpush2.msra.mxu1 %v208_v23  ;;  %v224_v13 = vld [vmem:[#allocation5 + $0x430] sm:$0xff]  ;;  %v221_v15 = vld [vmem:[#allocation5 + $0x418] sm:$0xff] }
  0xcb   :  { %920 = vmatpush1.msra.mxu0 %v272_v24  ;;  %882 = vmatprep.subr.mxu1 %v205_v25  ;;  %v156_v16 = vld [vmem:[#allocation5 + $0x210] sm:$0xff]  ;;  %v345_v18 = vld [vmem:[#allocation5 + $0x7f8] sm:$0xff] }
  0xcc   :  { %921 = vmatprep.subr.mxu0 %v269_v26  ;;  %883 = vmatpush2.msra.mxu1 %v204_v27  ;;  %v220_v17 = vld [vmem:[#allocation5 + $0x410] sm:$0xff]  ;;  %v409_v19 = vld [vmem:[#allocation5 + $0x9f8] sm:$0xff] }
  0xcd   :  { %922 = vmatpush1.msra.mxu0 %v268_v28  ;;  %884 = vmatprep.subr.mxu1 %v201_v29  ;;  %v344_v20 = vld [vmem:[#allocation5 + $0x7f0] sm:$0xff]  ;;  %v341_v22 = vld [vmem:[#allocation5 + $0x7d8] sm:$0xff] }
  0xce   :  { %923 = vmatprep.subr.mxu0 %v265_v30  ;;  %885 = vmatpush2.msra.mxu1 %v200_v31  ;;  %v408_v21 = vld [vmem:[#allocation5 + $0x9f0] sm:$0xff]  ;;  %v405_v23 = vld [vmem:[#allocation5 + $0x9d8] sm:$0xff] }
  0xcf   :  { %924 = vmatpush1.msra.mxu0 %v264_v32  ;;  %886 = vmatprep.subr.mxu1 %v197_v33  ;;  %v340_v24 = vld [vmem:[#allocation5 + $0x7d0] sm:$0xff]  ;;  %v337_v26 = vld [vmem:[#allocation5 + $0x7b8] sm:$0xff] }
  0xd0   :  { %925 = vmatprep.subr.mxu0 %v261_v34  ;;  %887 = vmatpush2.msra.mxu1 %v196_v35  ;;  %v404_v25 = vld [vmem:[#allocation5 + $0x9d0] sm:$0xff]  ;;  %v401_v27 = vld [vmem:[#allocation5 + $0x9b8] sm:$0xff] }
  0xd1   :  { %926 = vmatpush1.msra.mxu0 %v260_v36  ;;  %888 = vmatprep.subr.mxu1 %v193_v37  ;;  %v336_v28 = vld [vmem:[#allocation5 + $0x7b0] sm:$0xff]  ;;  %v397_v30 = vld [vmem:[#allocation5 + $0x998] sm:$0xff] }
  0xd2   :  { %927 = vmatprep.subr.mxu0 %v257_v38  ;;  %889 = vmatpush2.msra.mxu1 %v192_v39  ;;  %v400_v29 = vld [vmem:[#allocation5 + $0x9b0] sm:$0xff]  ;;  %v329_v32 = vld [vmem:[#allocation5 + $0x778] sm:$0xff] }
  0xd3   :  { %928 = vmatpush1.msra.mxu0 %v256_v40  ;;  %890 = vmatprep.subr.mxu1 %v189_v41  ;;  %v396_v31 = vld [vmem:[#allocation5 + $0x990] sm:$0xff]  ;;  %v393_v33 = vld [vmem:[#allocation5 + $0x978] sm:$0xff] }
  0xd4   :  { %929 = vmatprep.subr.mxu0 %v253_v42  ;;  %891 = vmatpush2.msra.mxu1 %v188_v43  ;;  %v328_v34 = vld [vmem:[#allocation5 + $0x770] sm:$0xff]  ;;  %v325_v36 = vld [vmem:[#allocation5 + $0x758] sm:$0xff] }
  0xd5   :  { %930 = vmatpush1.msra.mxu0 %v252_v44  ;;  %892 = vmatprep.subr.mxu1 %v185_v45  ;;  %v392_v35 = vld [vmem:[#allocation5 + $0x970] sm:$0xff]  ;;  %v389_v37 = vld [vmem:[#allocation5 + $0x958] sm:$0xff] }
  0xd6   :  { %931 = vmatprep.subr.mxu0 %v249_v46  ;;  %893 = vmatpush2.msra.mxu1 %v184_v47  ;;  %v324_v38 = vld [vmem:[#allocation5 + $0x750] sm:$0xff]  ;;  %v321_v40 = vld [vmem:[#allocation5 + $0x738] sm:$0xff] }
  0xd7   :  { %932 = vmatpush1.msra.mxu0 %v248_v48  ;;  %894 = vmatprep.subr.mxu1 %v181_v49  ;;  %v388_v39 = vld [vmem:[#allocation5 + $0x950] sm:$0xff]  ;;  %v385_v41 = vld [vmem:[#allocation5 + $0x938] sm:$0xff] }
  0xd8   :  { %933 = vmatprep.subr.mxu0 %v245_v50  ;;  %895 = vmatpush2.msra.mxu1 %v180_v51  ;;  %v320_v42 = vld [vmem:[#allocation5 + $0x730] sm:$0xff]  ;;  %v317_v44 = vld [vmem:[#allocation5 + $0x718] sm:$0xff] }
  0xd9   :  { %934 = vmatpush1.msra.mxu0 %v244_v52  ;;  %896 = vmatprep.subr.mxu1 %v177_v53  ;;  %v384_v43 = vld [vmem:[#allocation5 + $0x930] sm:$0xff]  ;;  %v381_v45 = vld [vmem:[#allocation5 + $0x918] sm:$0xff] }
  0xda   :  { %935 = vmatprep.subr.mxu0 %v241_v54  ;;  %897 = vmatpush2.msra.mxu1 %v176_v55  ;;  %v316_v46 = vld [vmem:[#allocation5 + $0x710] sm:$0xff]  ;;  %v313_v48 = vld [vmem:[#allocation5 + $0x6f8] sm:$0xff] }
  0xdb   :  { %936 = vmatpush1.msra.mxu0 %v240_v56  ;;  %898 = vmatprep.subr.mxu1 %v173_v57  ;;  %v380_v47 = vld [vmem:[#allocation5 + $0x910] sm:$0xff]  ;;  %v377_v49 = vld [vmem:[#allocation5 + $0x8f8] sm:$0xff] }
  0xdc   :  { %937 = vmatprep.subr.mxu0 %v237_v58  ;;  %899 = vmatpush2.msra.mxu1 %v172_v59  ;;  %v312_v50 = vld [vmem:[#allocation5 + $0x6f0] sm:$0xff]  ;;  %v309_v52 = vld [vmem:[#allocation5 + $0x6d8] sm:$0xff] }
  0xdd   :  { %938 = vmatpush1.msra.mxu0 %v236_v60  ;;  %900 = vmatprep.subr.mxu1 %v169_v61  ;;  %v376_v51 = vld [vmem:[#allocation5 + $0x8f0] sm:$0xff]  ;;  %v373_v53 = vld [vmem:[#allocation5 + $0x8d8] sm:$0xff] }
  0xde   :  { %939 = vmatprep.subr.mxu0 %v233_v62  ;;  %901 = vmatpush2.msra.mxu1 %v168_v0  ;;  %v308_v54 = vld [vmem:[#allocation5 + $0x6d0] sm:$0xff]  ;;  %v305_v56 = vld [vmem:[#allocation5 + $0x6b8] sm:$0xff] }
  0xdf   :  { %940 = vmatpush1.msra.mxu0 %v232_v1  ;;  %902 = vmatprep.subr.mxu1 %v165_v3  ;;  %v372_v55 = vld [vmem:[#allocation5 + $0x8d0] sm:$0xff]  ;;  %v369_v57 = vld [vmem:[#allocation5 + $0x8b8] sm:$0xff] }
  0xe0   :  { %941 = vmatprep.subr.mxu0 %v229_v4  ;;  %903 = vmatpush2.msra.mxu1 %v164_v5  ;;  %v304_v58 = vld [vmem:[#allocation5 + $0x6b0] sm:$0xff]  ;;  %v301_v60 = vld [vmem:[#allocation5 + $0x698] sm:$0xff] }
  0xe1   :  { %942 = vmatpush1.msra.mxu0 %v228_v6  ;;  %904 = vmatprep.subr.mxu1 %v161_v7  ;;  %v368_v59 = vld [vmem:[#allocation5 + $0x8b0] sm:$0xff]  ;;  %v365_v61 = vld [vmem:[#allocation5 + $0x898] sm:$0xff] }
  0xe2   :  { %943 = vmatprep.subr.mxu0 %v225_v8  ;;  %905 = vmatpush2.msra.mxu1 %v160_v10  ;;  %v300_v62 = vld [vmem:[#allocation5 + $0x690] sm:$0xff]  ;;  %v297_v1 = vld [vmem:[#allocation5 + $0x678] sm:$0xff] }
  0xe3   :  { %944 = vmatpush1.msra.mxu0 %v224_v13  ;;  %906 = vmatprep.subr.mxu1 %v157_v14  ;;  %v364_v0 = vld [vmem:[#allocation5 + $0x890] sm:$0xff]  ;;  %v361_v3 = vld [vmem:[#allocation5 + $0x878] sm:$0xff] }
  0xe4   :  { %945 = vmatprep.subr.mxu0 %v221_v15  ;;  %907 = vmatpush2.msra.mxu1 %v156_v16  ;;  %v296_v4 = vld [vmem:[#allocation5 + $0x670] sm:$0xff]  ;;  %v293_v6 = vld [vmem:[#allocation5 + $0x658] sm:$0xff] }
  0xe5   :  { %908 = vmatprep.mubr.f32.mxu1 %v1630_v63  ;;  %946 = vmatpush1.msra.mxu0 %v220_v17  ;;  %v333_v63 = vld [vmem:[#allocation5 + $0x798] sm:$0xff]  ;;  %v360_v5 = vld [vmem:[#allocation5 + $0x870] sm:$0xff] }
  0xe6   :  { %909 = vmatmul.mubr.f32.vlgmr.msra.gmra.mxu1 %v1632_v2  ;;  %947 = vmatprep.subr.mxu0 %v345_v18  ;;  %v332_v2 = vld [vmem:[#allocation5 + $0x790] sm:$0xff]  ;;  %v357_v7 = vld [vmem:[#allocation5 + $0x858] sm:$0xff] }
  0xe7   :  { %986 = vmatprep.subr.mxu1 %v409_v19  ;;  %948 = vmatpush2.msra.mxu0 %v344_v20  ;;  %v292_v8 = vld [vmem:[#allocation5 + $0x650] sm:$0xff]  ;;  %v289_v13 = vld [vmem:[#allocation5 + $0x638] sm:$0xff] }
  0xe8   :  { %987 = vmatpush1.msra.mxu1 %v408_v21  ;;  %949 = vmatprep.subr.mxu0 %v341_v22  ;;  %v356_v10 = vld [vmem:[#allocation5 + $0x850] sm:$0xff]  ;;  %v353_v14 = vld [vmem:[#allocation5 + $0x838] sm:$0xff] }
  0xe9   :  { %988 = vmatprep.subr.mxu1 %v405_v23  ;;  %950 = vmatpush2.msra.mxu0 %v340_v24  ;;  %v288_v15 = vld [vmem:[#allocation5 + $0x630] sm:$0xff]  ;;  %v285_v17 = vld [vmem:[#allocation5 + $0x618] sm:$0xff]  ;;  %v1443_v23 = vld [vmem:[#allocation2 + $0x18] sm:$0xff] }
  0xea   :  { %989 = vmatpush1.msra.mxu1 %v404_v25  ;;  %951 = vmatprep.subr.mxu0 %v337_v26  ;;  %v352_v16 = vld [vmem:[#allocation5 + $0x830] sm:$0xff]  ;;  %v349_v18 = vld [vmem:[#allocation5 + $0x818] sm:$0xff] }
  0xeb   :  { %990 = vmatprep.subr.mxu1 %v401_v27  ;;  %952 = vmatpush2.msra.mxu0 %v336_v28  ;;  %v284_v19 = vld [vmem:[#allocation5 + $0x610] sm:$0xff]  ;;  %v473_v21 = vld [vmem:[#allocation5 + $0xbf8] sm:$0xff] }
  0xec   :  { %991 = vmatpush1.msra.mxu1 %v400_v29  ;;  %953 = vmatprep.subr.mxu0 %v333_v63  ;;  %v348_v20 = vld [vmem:[#allocation5 + $0x810] sm:$0xff]  ;;  %v537_v22 = vld [vmem:[#allocation5 + $0xdf8] sm:$0xff] }
  0xed   :  { %992 = vmatprep.subr.mxu1 %v397_v30  ;;  %954 = vmatpush2.msra.mxu0 %v332_v2  ;;  %v472_v24 = vld [vmem:[#allocation5 + $0xbf0] sm:$0xff]  ;;  %v1444_v26 = vld [vmem:[#allocation2 + $0x10] sm:$0xff] }
  0xee   :  { %993 = vmatpush1.msra.mxu1 %v396_v31  ;;  %955 = vmatprep.subr.mxu0 %v329_v32  ;;  %v536_v25 = vld [vmem:[#allocation5 + $0xdf0] sm:$0xff]  ;;  %v469_v27 = vld [vmem:[#allocation5 + $0xbd8] sm:$0xff] }
  0xef   :  { %994 = vmatprep.subr.mxu1 %v393_v33  ;;  %956 = vmatpush2.msra.mxu0 %v328_v34  ;;  %v533_v28 = vld [vmem:[#allocation5 + $0xdd8] sm:$0xff]  ;;  %v468_v29 = vld [vmem:[#allocation5 + $0xbd0] sm:$0xff] }
  0xf0   :  { %995 = vmatpush1.msra.mxu1 %v392_v35  ;;  %957 = vmatprep.subr.mxu0 %v325_v36  ;;  %v532_v63 = vld [vmem:[#allocation5 + $0xdd0] sm:$0xff]  ;;  %v465_v30 = vld [vmem:[#allocation5 + $0xbb8] sm:$0xff] }
  0xf1   :  { %996 = vmatprep.subr.mxu1 %v389_v37  ;;  %958 = vmatpush2.msra.mxu0 %v324_v38  ;;  %v529_v2 = vld [vmem:[#allocation5 + $0xdb8] sm:$0xff]  ;;  %v464_v31 = vld [vmem:[#allocation5 + $0xbb0] sm:$0xff] }
  0xf2   :  { %997 = vmatpush1.msra.mxu1 %v388_v39  ;;  %959 = vmatprep.subr.mxu0 %v321_v40  ;;  %v528_v32 = vld [vmem:[#allocation5 + $0xdb0] sm:$0xff]  ;;  %v461_v33 = vld [vmem:[#allocation5 + $0xb98] sm:$0xff] }
  0xf3   :  { %998 = vmatprep.subr.mxu1 %v385_v41  ;;  %960 = vmatpush2.msra.mxu0 %v320_v42  ;;  %v525_v34 = vld [vmem:[#allocation5 + $0xd98] sm:$0xff]  ;;  %v460_v35 = vld [vmem:[#allocation5 + $0xb90] sm:$0xff] }
  0xf4   :  { %999 = vmatpush1.msra.mxu1 %v384_v43  ;;  %961 = vmatprep.subr.mxu0 %v317_v44  ;;  %v524_v36 = vld [vmem:[#allocation5 + $0xd90] sm:$0xff]  ;;  %v457_v37 = vld [vmem:[#allocation5 + $0xb78] sm:$0xff] }
  0xf5   :  { %1000 = vmatprep.subr.mxu1 %v381_v45  ;;  %962 = vmatpush2.msra.mxu0 %v316_v46  ;;  %v521_v38 = vld [vmem:[#allocation5 + $0xd78] sm:$0xff]  ;;  %v456_v39 = vld [vmem:[#allocation5 + $0xb70] sm:$0xff] }
  0xf6   :  { %1001 = vmatpush1.msra.mxu1 %v380_v47  ;;  %963 = vmatprep.subr.mxu0 %v313_v48  ;;  %v520_v40 = vld [vmem:[#allocation5 + $0xd70] sm:$0xff]  ;;  %v453_v41 = vld [vmem:[#allocation5 + $0xb58] sm:$0xff] }
  0xf7   :  { %1002 = vmatprep.subr.mxu1 %v377_v49  ;;  %964 = vmatpush2.msra.mxu0 %v312_v50  ;;  %v517_v42 = vld [vmem:[#allocation5 + $0xd58] sm:$0xff]  ;;  %v452_v43 = vld [vmem:[#allocation5 + $0xb50] sm:$0xff] }
  0xf8   :  { %1003 = vmatpush1.msra.mxu1 %v376_v51  ;;  %965 = vmatprep.subr.mxu0 %v309_v52  ;;  %v516_v44 = vld [vmem:[#allocation5 + $0xd50] sm:$0xff]  ;;  %v449_v45 = vld [vmem:[#allocation5 + $0xb38] sm:$0xff] }
  0xf9   :  { %1004 = vmatprep.subr.mxu1 %v373_v53  ;;  %966 = vmatpush2.msra.mxu0 %v308_v54  ;;  %v513_v46 = vld [vmem:[#allocation5 + $0xd38] sm:$0xff]  ;;  %v448_v47 = vld [vmem:[#allocation5 + $0xb30] sm:$0xff] }
  0xfa   :  { %1005 = vmatpush1.msra.mxu1 %v372_v55  ;;  %967 = vmatprep.subr.mxu0 %v305_v56  ;;  %v512_v48 = vld [vmem:[#allocation5 + $0xd30] sm:$0xff]  ;;  %v445_v49 = vld [vmem:[#allocation5 + $0xb18] sm:$0xff] }
  0xfb   :  { %1006 = vmatprep.subr.mxu1 %v369_v57  ;;  %968 = vmatpush2.msra.mxu0 %v304_v58  ;;  %v509_v50 = vld [vmem:[#allocation5 + $0xd18] sm:$0xff]  ;;  %v444_v51 = vld [vmem:[#allocation5 + $0xb10] sm:$0xff] }
  0xfc   :  { %1007 = vmatpush1.msra.mxu1 %v368_v59  ;;  %969 = vmatprep.subr.mxu0 %v301_v60  ;;  %v508_v52 = vld [vmem:[#allocation5 + $0xd10] sm:$0xff]  ;;  %v441_v53 = vld [vmem:[#allocation5 + $0xaf8] sm:$0xff] }
  0xfd   :  { %1008 = vmatprep.subr.mxu1 %v365_v61  ;;  %970 = vmatpush2.msra.mxu0 %v300_v62  ;;  %v505_v54 = vld [vmem:[#allocation5 + $0xcf8] sm:$0xff]  ;;  %v440_v55 = vld [vmem:[#allocation5 + $0xaf0] sm:$0xff] }
  0xfe   :  { %1009 = vmatpush1.msra.mxu1 %v364_v0  ;;  %971 = vmatprep.subr.mxu0 %v297_v1  ;;  %v504_v56 = vld [vmem:[#allocation5 + $0xcf0] sm:$0xff]  ;;  %v437_v57 = vld [vmem:[#allocation5 + $0xad8] sm:$0xff] }
  0xff   :  { %1010 = vmatprep.subr.mxu1 %v361_v3  ;;  %972 = vmatpush2.msra.mxu0 %v296_v4  ;;  %v501_v58 = vld [vmem:[#allocation5 + $0xcd8] sm:$0xff]  ;;  %v436_v59 = vld [vmem:[#allocation5 + $0xad0] sm:$0xff] }
 0x100   :  { %1011 = vmatpush1.msra.mxu1 %v360_v5  ;;  %973 = vmatprep.subr.mxu0 %v293_v6  ;;  %v500_v60 = vld [vmem:[#allocation5 + $0xcd0] sm:$0xff]  ;;  %v433_v61 = vld [vmem:[#allocation5 + $0xab8] sm:$0xff] }
 0x101   :  { %1012 = vmatprep.subr.mxu1 %v357_v7  ;;  %974 = vmatpush2.msra.mxu0 %v292_v8  ;;  %v497_v62 = vld [vmem:[#allocation5 + $0xcb8] sm:$0xff]  ;;  %v432_v0 = vld [vmem:[#allocation5 + $0xab0] sm:$0xff] }
 0x102   :  { %1013 = vmatpush1.msra.mxu1 %v356_v10  ;;  %975 = vmatprep.subr.mxu0 %v289_v13  ;;  %v496_v1 = vld [vmem:[#allocation5 + $0xcb0] sm:$0xff]  ;;  %v429_v3 = vld [vmem:[#allocation5 + $0xa98] sm:$0xff] }
 0x103   :  { %1014 = vmatprep.subr.mxu1 %v353_v14  ;;  %976 = vmatpush2.msra.mxu0 %v288_v15  ;;  %v493_v4 = vld [vmem:[#allocation5 + $0xc98] sm:$0xff]  ;;  %v428_v5 = vld [vmem:[#allocation5 + $0xa90] sm:$0xff] }
 0x104   :  { %1015 = vmatpush1.msra.mxu1 %v352_v16  ;;  %977 = vmatprep.subr.mxu0 %v285_v17  ;;  %v492_v6 = vld [vmem:[#allocation5 + $0xc90] sm:$0xff]  ;;  %v425_v7 = vld [vmem:[#allocation5 + $0xa78] sm:$0xff] }
 0x105   :  { %1016 = vmatprep.subr.mxu1 %v349_v18  ;;  %978 = vmatpush2.msra.mxu0 %v284_v19  ;;  %v489_v8 = vld [vmem:[#allocation5 + $0xc78] sm:$0xff]  ;;  %v424_v10 = vld [vmem:[#allocation5 + $0xa70] sm:$0xff] }
 0x106   :  { %979 = vmatprep.mubr.f32.mxu0 %v1443_v23  ;;  %1017 = vmatpush1.msra.mxu1 %v348_v20  ;;  %v488_v13 = vld [vmem:[#allocation5 + $0xc70] sm:$0xff]  ;;  %v421_v14 = vld [vmem:[#allocation5 + $0xa58] sm:$0xff] }
 0x107   :  { %980 = vmatmul.mubr.f32.vlgmr.msra.gmra.mxu0 %v1444_v26  ;;  %1018 = vmatprep.subr.mxu1 %v473_v21  ;;  %v485_v15 = vld [vmem:[#allocation5 + $0xc58] sm:$0xff]  ;;  %v420_v16 = vld [vmem:[#allocation5 + $0xa50] sm:$0xff] }
 0x108   :  { %1057 = vmatprep.subr.mxu0 %v537_v22  ;;  %1019 = vmatpush2.msra.mxu1 %v472_v24  ;;  %v484_v17 = vld [vmem:[#allocation5 + $0xc50] sm:$0xff]  ;;  %v417_v18 = vld [vmem:[#allocation5 + $0xa38] sm:$0xff] }
 0x109   :  { %1058 = vmatpush1.msra.mxu0 %v536_v25  ;;  %1020 = vmatprep.subr.mxu1 %v469_v27  ;;  %v481_v19 = vld [vmem:[#allocation5 + $0xc38] sm:$0xff]  ;;  %v416_v20 = vld [vmem:[#allocation5 + $0xa30] sm:$0xff] }
 0x10a   :  { %1059 = vmatprep.subr.mxu0 %v533_v28  ;;  %1021 = vmatpush2.msra.mxu1 %v468_v29  ;;  %v480_v21 = vld [vmem:[#allocation5 + $0xc30] sm:$0xff]  ;;  %v413_v22 = vld [vmem:[#allocation5 + $0xa18] sm:$0xff] }
 0x10b   :  { %1060 = vmatpush1.msra.mxu0 %v532_v63  ;;  %1022 = vmatprep.subr.mxu1 %v465_v30  ;;  %v477_v23 = vld [vmem:[#allocation5 + $0xc18] sm:$0xff]  ;;  %v412_v24 = vld [vmem:[#allocation5 + $0xa10] sm:$0xff] }
 0x10c   :  { %1061 = vmatprep.subr.mxu0 %v529_v2  ;;  %1023 = vmatpush2.msra.mxu1 %v464_v31  ;;  %v476_v25 = vld [vmem:[#allocation5 + $0xc10] sm:$0xff]  ;;  %v1163_v26 = vld [vmem:[#allocation8 + $0xf8] sm:$0xff]  ;;  %v1160_v31 = vld [vmem:[#allocation8 + $0xe0] sm:$0xff] }
 0x10d   :  { %1062 = vmatpush1.msra.mxu0 %v528_v32  ;;  %1024 = vmatprep.subr.mxu1 %v461_v33  ;;  %v1147_v27 = vld [vmem:[#allocation8 + $0x78] sm:$0xff]  ;;  %v1162_v29 = vld [vmem:[#allocation8 + $0xf0] sm:$0xff]  ;;  %v1161_v30 = vld [vmem:[#allocation8 + $0xe8] sm:$0xff] }
 0x10e   :  { %1063 = vmatprep.subr.mxu0 %v525_v34  ;;  %1025 = vmatpush2.msra.mxu1 %v460_v35  ;;  %v1445_v28 = vld [vmem:[#allocation2 + $0x30] sm:$0xff]  ;;  %v1145_v2 = vld [vmem:[#allocation8 + $0x68] sm:$0xff] }
 0x10f   :  { %1064 = vmatpush1.msra.mxu0 %v524_v36  ;;  %1026 = vmatprep.subr.mxu1 %v457_v37  ;;  %v1146_v63 = vld [vmem:[#allocation8 + $0x70] sm:$0xff]  ;;  %v1159_v32 = vld [vmem:[#allocation8 + $0xd8] sm:$0xff]  ;;  %v1157_v34 = vld [vmem:[#allocation8 + $0xc8] sm:$0xff] }
 0x110   :  { %1065 = vmatprep.subr.mxu0 %v521_v38  ;;  %1027 = vmatpush2.msra.mxu1 %v456_v39  ;;  %v1158_v33 = vld [vmem:[#allocation8 + $0xd0] sm:$0xff]  ;;  %v1141_v35 = vld [vmem:[#allocation8 + $0x48] sm:$0xff]  ;;  %v1156_v36 = vld [vmem:[#allocation8 + $0xc0] sm:$0xff] }
 0x111   :  { %1066 = vmatpush1.msra.mxu0 %v520_v40  ;;  %1028 = vmatprep.subr.mxu1 %v453_v41  ;;  %v1140_v37 = vld [vmem:[#allocation8 + $0x40] sm:$0xff]  ;;  %v1155_v38 = vld [vmem:[#allocation8 + $0xb8] sm:$0xff]  ;;  %v1154_v40 = vld [vmem:[#allocation8 + $0xb0] sm:$0xff] }
 0x112   :  { %1067 = vmatprep.subr.mxu0 %v517_v42  ;;  %1029 = vmatpush2.msra.mxu1 %v452_v43  ;;  %v1139_v39 = vld [vmem:[#allocation8 + $0x38] sm:$0xff]  ;;  %v1138_v41 = vld [vmem:[#allocation8 + $0x30] sm:$0xff]  ;;  %v1153_v42 = vld [vmem:[#allocation8 + $0xa8] sm:$0xff] }
 0x113   :  { %1068 = vmatpush1.msra.mxu0 %v516_v44  ;;  %1030 = vmatprep.subr.mxu1 %v449_v45  ;;  %v1137_v43 = vld [vmem:[#allocation8 + $0x28] sm:$0xff]  ;;  %v1152_v44 = vld [vmem:[#allocation8 + $0xa0] sm:$0xff] }
 0x114   :  { %1069 = vmatprep.subr.mxu0 %v513_v46  ;;  %1031 = vmatpush2.msra.mxu1 %v448_v47  ;;  %v1136_v45 = vld [vmem:[#allocation8 + $0x20] sm:$0xff]  ;;  %v1151_v46 = vld [vmem:[#allocation8 + $0x98] sm:$0xff] }
 0x115   :  { %1070 = vmatpush1.msra.mxu0 %v512_v48  ;;  %1032 = vmatprep.subr.mxu1 %v445_v49  ;;  %v1135_v47 = vld [vmem:[#allocation8 + $0x18] sm:$0xff]  ;;  %v1150_v48 = vld [vmem:[#allocation8 + $0x90] sm:$0xff] }
 0x116   :  { %1071 = vmatprep.subr.mxu0 %v509_v50  ;;  %1033 = vmatpush2.msra.mxu1 %v444_v51  ;;  %v1134_v49 = vld [vmem:[#allocation8 + $0x10] sm:$0xff]  ;;  %v1149_v50 = vld [vmem:[#allocation8 + $0x88] sm:$0xff] }
 0x117   :  { %1072 = vmatpush1.msra.mxu0 %v508_v52  ;;  %1034 = vmatprep.subr.mxu1 %v441_v53  ;;  %v1133_v51 = vld [vmem:[#allocation8 + $0x8] sm:$0xff]  ;;  %v1148_v52 = vld [vmem:[#allocation8 + $0x80] sm:$0xff] }
 0x118   :  { %1073 = vmatprep.subr.mxu0 %v505_v54  ;;  %1035 = vmatpush2.msra.mxu1 %v440_v55  ;;  %v1132_v53 = vld [vmem:[#allocation8] sm:$0xff]  ;;  %v1195_v54 = vld [vmem:[#allocation8 + $0x1f8] sm:$0xff] }
 0x119   :  { %1074 = vmatpush1.msra.mxu0 %v504_v56  ;;  %1036 = vmatprep.subr.mxu1 %v437_v57  ;;  %v1179_v55 = vld [vmem:[#allocation8 + $0x178] sm:$0xff]  ;;  %v1194_v56 = vld [vmem:[#allocation8 + $0x1f0] sm:$0xff] }
 0x11a   :  { %1075 = vmatprep.subr.mxu0 %v501_v58  ;;  %1037 = vmatpush2.msra.mxu1 %v436_v59  ;;  %v1178_v57 = vld [vmem:[#allocation8 + $0x170] sm:$0xff]  ;;  %v1193_v58 = vld [vmem:[#allocation8 + $0x1e8] sm:$0xff] }
 0x11b   :  { %1076 = vmatpush1.msra.mxu0 %v500_v60  ;;  %1038 = vmatprep.subr.mxu1 %v433_v61  ;;  %v1177_v59 = vld [vmem:[#allocation8 + $0x168] sm:$0xff]  ;;  %v1192_v60 = vld [vmem:[#allocation8 + $0x1e0] sm:$0xff] }
 0x11c   :  { %1077 = vmatprep.subr.mxu0 %v497_v62  ;;  %1039 = vmatpush2.msra.mxu1 %v432_v0  ;;  %v1176_v61 = vld [vmem:[#allocation8 + $0x160] sm:$0xff]  ;;  %v1191_v62 = vld [vmem:[#allocation8 + $0x1d8] sm:$0xff] }
 0x11d   :  { %1078 = vmatpush1.msra.mxu0 %v496_v1  ;;  %1040 = vmatprep.subr.mxu1 %v429_v3  ;;  %v1175_v0 = vld [vmem:[#allocation8 + $0x158] sm:$0xff]  ;;  %v1190_v1 = vld [vmem:[#allocation8 + $0x1d0] sm:$0xff] }
 0x11e   :  { %1079 = vmatprep.subr.mxu0 %v493_v4  ;;  %1041 = vmatpush2.msra.mxu1 %v428_v5  ;;  %v1174_v3 = vld [vmem:[#allocation8 + $0x150] sm:$0xff]  ;;  %v1189_v4 = vld [vmem:[#allocation8 + $0x1c8] sm:$0xff] }
 0x11f   :  { %1080 = vmatpush1.msra.mxu0 %v492_v6  ;;  %1042 = vmatprep.subr.mxu1 %v425_v7  ;;  %v1173_v5 = vld [vmem:[#allocation8 + $0x148] sm:$0xff]  ;;  %v1188_v6 = vld [vmem:[#allocation8 + $0x1c0] sm:$0xff] }
 0x120   :  { %1081 = vmatprep.subr.mxu0 %v489_v8  ;;  %1043 = vmatpush2.msra.mxu1 %v424_v10  ;;  %v1172_v7 = vld [vmem:[#allocation8 + $0x140] sm:$0xff]  ;;  %v1187_v8 = vld [vmem:[#allocation8 + $0x1b8] sm:$0xff] }
 0x121   :  { %1082 = vmatpush1.msra.mxu0 %v488_v13  ;;  %1044 = vmatprep.subr.mxu1 %v421_v14  ;;  %v1171_v10 = vld [vmem:[#allocation8 + $0x138] sm:$0xff]  ;;  %v1186_v13 = vld [vmem:[#allocation8 + $0x1b0] sm:$0xff] }
 0x122   :  { %1083 = vmatprep.subr.mxu0 %v485_v15  ;;  %1045 = vmatpush2.msra.mxu1 %v420_v16  ;;  %v1170_v14 = vld [vmem:[#allocation8 + $0x130] sm:$0xff]  ;;  %v1185_v15 = vld [vmem:[#allocation8 + $0x1a8] sm:$0xff] }
 0x123   :  { %1084 = vmatpush1.msra.mxu0 %v484_v17  ;;  %1046 = vmatprep.subr.mxu1 %v417_v18  ;;  %v1169_v16 = vld [vmem:[#allocation8 + $0x128] sm:$0xff]  ;;  %v1184_v17 = vld [vmem:[#allocation8 + $0x1a0] sm:$0xff] }
 0x124   :  { %1085 = vmatprep.subr.mxu0 %v481_v19  ;;  %1047 = vmatpush2.msra.mxu1 %v416_v20  ;;  %v1168_v18 = vld [vmem:[#allocation8 + $0x120] sm:$0xff]  ;;  %v1183_v19 = vld [vmem:[#allocation8 + $0x198] sm:$0xff] }
 0x125   :  { %1086 = vmatpush1.msra.mxu0 %v480_v21  ;;  %1048 = vmatprep.subr.mxu1 %v413_v22  ;;  %v1167_v20 = vld [vmem:[#allocation8 + $0x118] sm:$0xff]  ;;  %v1182_v21 = vld [vmem:[#allocation8 + $0x190] sm:$0xff] }
 0x126   :  { %1087 = vmatprep.subr.mxu0 %v477_v23  ;;  %1049 = vmatpush2.msra.mxu1 %v412_v24  ;;  %v1166_v22 = vld [vmem:[#allocation8 + $0x110] sm:$0xff]  ;;  %v1181_v23 = vld [vmem:[#allocation8 + $0x188] sm:$0xff] }
 0x127   :  { %1050 = vmatprep.mubr.f32.mxu1 %v1637_v9  ;;  %1088 = vmatpush1.msra.mxu0 %v476_v25  ;;  %v1144_v9 = vld [vmem:[#allocation8 + $0x60] sm:$0xff]  ;;  %v1165_v24 = vld [vmem:[#allocation8 + $0x108] sm:$0xff]  ;;  %v540_v25 = vlaneseq }
 0x128   :  { %1121 = vmatprep.mubr.f32.mxu0 %v1583_v11  ;;  %1051 = vmatmul.mubr.f32.vlgmr.msra.gmra.mxu1 %v1639_v12  ;;  %v1143_v11 = vld [vmem:[#allocation8 + $0x58] sm:$0xff]  ;;  %v1142_v12 = vld [vmem:[#allocation8 + $0x50] sm:$0xff] }
 0x129   :  { %1122 = vmatmul.mubr.f32.vlgmr.msra.gmra.mxu0 %v1445_v28  ;;  %1362 = vmatprep.subr.mxu0 %v1163_v26  ;;  %v1180_v26 = vld [vmem:[#allocation8 + $0x180] sm:$0xff]  ;;  %v541_v28 = vshrl.u32 %v540_v25, 7 }
 0x12a   :  { %1363 = vmatpush3.msra.mxu0 %v1147_v27  ;;  %1397 = vmatprep.subr.mxu1 %v1195_v54  ;;  %v1164_v27 = vld [vmem:[#allocation8 + $0x100] sm:$0xff] }
 0x12b   :  { %1364 = vmatprep.subr.mxu0 %v1162_v29  ;;  %1398 = vmatpush3.msra.mxu1 %v1179_v55  ;;  %v542_v29 = vsub.s32 0, %v541_v28 }
 0x12c   :  { %1365 = vmatpush3.msra.mxu0 %v1146_v63  ;;  %1399 = vmatprep.subr.mxu1 %v1194_v56  ;;  %v538_v63 = vld [vmem:[#allocation7] sm:$0xf] }
 0x12d   :  { %1366 = vmatprep.subr.mxu0 %v1161_v30  ;;  %1400 = vmatpush3.msra.mxu1 %v1178_v57  ;;  %v546_v30 = vsub.s32 1, %v541_v28 }
 0x12e   :  { %1367 = vmatpush3.msra.mxu0 %v1145_v2  ;;  %1401 = vmatprep.subr.mxu1 %v1193_v58 }
 0x12f   :  { %1368 = vmatprep.subr.mxu0 %v1160_v31  ;;  %1402 = vmatpush3.msra.mxu1 %v1177_v59  ;;  %v543_v31 = vrot.slane %v538_v63, %v542_v29 }
 0x130   :  { %1369 = vmatpush3.msra.mxu0 %v1144_v9  ;;  %1403 = vmatprep.subr.mxu1 %v1192_v60  ;;  %v547_v9 = vrot.slane %v538_v63, %v546_v30 }
 0x131   :  { %1370 = vmatprep.subr.mxu0 %v1159_v32  ;;  %1404 = vmatpush3.msra.mxu1 %v1176_v61 }
 0x132   :  { %1371 = vmatpush3.msra.mxu0 %v1143_v11  ;;  %1405 = vmatprep.subr.mxu1 %v1191_v62 }
 0x133   :  { %1372 = vmatprep.subr.mxu0 %v1158_v33  ;;  %1406 = vmatpush3.msra.mxu1 %v1175_v0 }
 0x134   :  { %1373 = vmatpush3.msra.mxu0 %v1142_v12  ;;  %1407 = vmatprep.subr.mxu1 %v1190_v1 }
 0x135   :  { %1374 = vmatprep.subr.mxu0 %v1157_v34  ;;  %1408 = vmatpush3.msra.mxu1 %v1174_v3 }
 0x136   :  { %1375 = vmatpush3.msra.mxu0 %v1141_v35  ;;  %1409 = vmatprep.subr.mxu1 %v1189_v4 }
 0x137   :  { %1376 = vmatprep.subr.mxu0 %v1156_v36  ;;  %1410 = vmatpush3.msra.mxu1 %v1173_v5 }
 0x138   :  { %1377 = vmatpush3.msra.mxu0 %v1140_v37  ;;  %1411 = vmatprep.subr.mxu1 %v1188_v6 }
 0x139   :  { %1378 = vmatprep.subr.mxu0 %v1155_v38  ;;  %1412 = vmatpush3.msra.mxu1 %v1172_v7 }
 0x13a   :  { %1379 = vmatpush3.msra.mxu0 %v1139_v39  ;;  %1413 = vmatprep.subr.mxu1 %v1187_v8 }
 0x13b   :  { %1380 = vmatprep.subr.mxu0 %v1154_v40  ;;  %1414 = vmatpush3.msra.mxu1 %v1171_v10 }
 0x13c   :  { %1381 = vmatpush3.msra.mxu0 %v1138_v41  ;;  %1415 = vmatprep.subr.mxu1 %v1186_v13  ;;  %v1361_v13 = vld [vmem:[#allocation10] ss:$0 sm:$0xff] }
 0x13d   :  { %1382 = vmatprep.subr.mxu0 %v1153_v42  ;;  %1416 = vmatpush3.msra.mxu1 %v1170_v14 }
 0x13e   :  { %1383 = vmatpush3.msra.mxu0 %v1137_v43  ;;  %1417 = vmatprep.subr.mxu1 %v1185_v15 }
 0x13f   :  { %1384 = vmatprep.subr.mxu0 %v1152_v44  ;;  %1418 = vmatpush3.msra.mxu1 %v1169_v16 }
 0x140   :  { %1385 = vmatpush3.msra.mxu0 %v1136_v45  ;;  %1419 = vmatprep.subr.mxu1 %v1184_v17 }
 0x141   :  { %1386 = vmatprep.subr.mxu0 %v1151_v46  ;;  %1420 = vmatpush3.msra.mxu1 %v1168_v18 }
 0x142   :  { %1387 = vmatpush3.msra.mxu0 %v1135_v47  ;;  %1421 = vmatprep.subr.mxu1 %v1183_v19  ;;  %v626_v2 = vpop.f32.mrf.mxu0  ;;  %v550_v47 = vsub.s32 2, %v541_v28 }
 0x143   :  { %1388 = vmatprep.subr.mxu0 %v1150_v48  ;;  %1422 = vmatpush3.msra.mxu1 %v1167_v20  ;;  %v697_v32 = vpop.f32.mrf.mxu1  ;;  %v627_v33 = vadd.f32 %v626_v2, %v543_v31  ;;  %v554_v48 = vsub.s32 3, %v541_v28 }
 0x144   :  { %1389 = vmatpush3.msra.mxu0 %v1134_v49  ;;  %1423 = vmatprep.subr.mxu1 %v1182_v21  ;;  %v628_v11 = vpop.f32.mrf.mxu0 }
 0x145   :  { %1390 = vmatprep.subr.mxu0 %v1149_v50  ;;  %1424 = vmatpush3.msra.mxu1 %v1166_v22  ;;  %v629_v12 = vadd.f32 %v628_v11, %v547_v9  ;;  %v699_v34 = vpop.f32.mrf.mxu1  ;;  %v698_v35 = vadd.f32 %v697_v32, %v627_v33  ;;  %v551_v50 = vrot.slane %v538_v63, %v550_v47 }
 0x146   :  { %1391 = vmatpush3.msra.mxu0 %v1133_v51  ;;  %1425 = vmatprep.subr.mxu1 %v1181_v23 }
 0x147   :  { %1392 = vmatprep.subr.mxu0 %v1148_v52  ;;  %1426 = vmatpush3.msra.mxu1 %v1165_v24  ;;  %v700_v38 = vadd.f32 %v699_v34, %v629_v12  ;;  %v555_v52 = vrot.slane %v538_v63, %v554_v48 }
 0x148   :  { %1393 = vmatpush3.msra.mxu0 %v1132_v53  ;;  %1427 = vmatprep.subr.mxu1 %v1180_v26 }
 0x149   :  { %1428 = vmatpush3.msra.mxu1 %v1164_v27 }
 0x164   :  { %v839_v36 = vpop.f32.mrf.mxu1 }
 0x166   :  { %v841_v42 = vpop.f32.mrf.mxu1 }
 0x185   :  { %v768_v37 = vpop.f32.mrf.mxu0 }
 0x186   :  { %v769_v39 = vadd.f32 %v768_v37, %v698_v35 }
 0x187   :  { %v770_v40 = vpop.f32.mrf.mxu0 }
 0x188   :  { %v771_v41 = vadd.f32 %v770_v40, %v700_v38  ;;  %v840_v43 = vadd.f32 %v839_v36, %v769_v39 }
 0x18a   :  { %v842_v44 = vadd.f32 %v841_v42, %v771_v41  ;;  %v1128_v46 = vmax.f32 %v840_v43, 0.0 }
 0x18c   :  { %v1129_v45 = vmax.f32 %v842_v44, 0.0 }
 0x18e   :  { %1267 = vmatprep.mubr.f32.mxu0 %v1129_v45 }
 0x18f   :  { %1268 = vmatmul.mubr.f32.vlgmr.msra.gmra.mxu0 %v1128_v46 }
 0x1a6   :  { %v910_v49 = vpop.f32.mrf.mxu1 }
 0x1a7   :  { %v911_v54 = vadd.f32 %v910_v49, %v551_v50 }
 0x1a8   :  { %v912_v53 = vpop.f32.mrf.mxu1 }
 0x1a9   :  { %v913_v56 = vadd.f32 %v912_v53, %v555_v52 }
 0x1c7   :  { %v981_v51 = vpop.f32.mrf.mxu0 }
 0x1c8   :  { %v982_v57 = vadd.f32 %v981_v51, %v911_v54 }
 0x1c9   :  { %v983_v55 = vpop.f32.mrf.mxu0 }
 0x1ca   :  { %v984_v60 = vadd.f32 %v983_v55, %v913_v56 }
 0x1e8   :  { %v1052_v58 = vpop.f32.mrf.mxu1 }
 0x1e9   :  { %v1123_v59 = vpop.f32.mrf.mxu0  ;;  %v1053_v61 = vadd.f32 %v1052_v58, %v982_v57 }
 0x1ea   :  { %v1054_v62 = vpop.f32.mrf.mxu1 }
 0x1eb   :  { %v1055_v0 = vadd.f32 %v1054_v62, %v984_v60  ;;  %v1124_v1 = vadd.f32 %v1123_v59, %v1053_v61  ;;  %v1125_v3 = vpop.f32.mrf.mxu0 }
 0x1ed   :  { %v1126_v4 = vadd.f32 %v1125_v3, %v1055_v0  ;;  %v1130_v6 = vmax.f32 %v1124_v1, 0.0 }
 0x1ef   :  { %v1131_v5 = vmax.f32 %v1126_v4, 0.0 }
 0x1f1   :  { %1337 = vmatprep.mubr.f32.mxu1 %v1131_v5 }
 0x1f2   :  { %1338 = vmatmul.mubr.f32.vlgmr.msra.gmra.mxu1 %v1130_v6 }
 0x24f   :  { %v1394_v7 = vpop.f32.mrf.mxu0 }
 0x251   :  { %v1395_v8 = vpop.f32.mrf.mxu0 }
 0x252   :  { %v1396_v10 = vadd.f32 %v1395_v8, %v1394_v7 }
 0x254   :  { %v1270_v16 = vadd.f32 %v1396_v10, %v1361_v13 }
 0x2b2   :  { %v1429_v14 = vpop.f32.mrf.mxu1 }
 0x2b4   :  { %v1430_v15 = vpop.f32.mrf.mxu1 }
 0x2b5   :  { %v1431_v17 = vadd.f32 %v1430_v15, %v1429_v14 }
 0x2b7   :  { %v1340_v18 = vadd.f32 %v1431_v17, %v1270_v16 }
 0x2b9   :  { %1343 = vst [vmem:[#allocation11] sm:$0xff] %v1340_v18 }
 0x2ba   :  { %1557 = shalt.err (!%p1554_p1)
}
 0x2bb   :  { %1353 = dma.vmem_to_hbm [thread:$0]  %s1351_s4, 128, %s1656_s5, [#allocation4]  }
 0x2bc   :  { %1572 = dma.done.wait [#allocation4], 128  }
 0x2bd   :  { %1573 = vsyncadd [#allocation4], 4294967168 }
 0x2be   :  { %1357 = vsyncpa [#allocation3], 1 }
 0x2bf   :  { %1358 = vsyncpa [#allocation6], 1 }
 0x2c0   :  { %1359 = vsyncpa [#allocation9], 1 }
 0x2c1   :  { %1360 = vsyncpa [#allocation4], 1 }

</bundles_post_ra>
